<compile_context>
chip_gen: v7x
topology: tpu7x:2x2x1
jax: 0.10.0
libtpu: 0.0.40
codegen_flags: <defaults>
</compile_context>

<pallas_src>
import functools

import jax
import jax.numpy as jnp
from jax.experimental import pallas as pl
from jax.experimental.pallas import tpu as pltpu

NOISE_DIM = 64          # hard-coded in the PyTorch model (64 + classes input features)
LEAKY_SLOPE = 0.2
BN_EPS = 0.8            # nn.BatchNorm1d(out_feat, 0.8) -> second positional arg is eps
LANE = 128


def _round_up(n, m):
    return ((n + m - 1) // m) * m


def _leaky_relu(z):
    return jnp.where(z > 0, z, LEAKY_SLOPE * z)


def _batchnorm_train_fused(z, gamma, beta):
    # PyTorch BatchNorm1d training mode: per-batch mean + *biased* variance, then affine.
    # Single pass: sum and sum-of-squares together; var = E[z^2] - mean^2 (eps=0.8 keeps it safe).
    # TODO(synk): switch to two-pass/Welford variance if used with real trained (large) activations.
    inv_n = 1.0 / z.shape[0]
    s = jnp.sum(z, axis=0, keepdims=True)
    s2 = jnp.sum(z * z, axis=0, keepdims=True)
    mean = s * inv_n
    var = s2 * inv_n - mean * mean
    return (z - mean) * jax.lax.rsqrt(var + BN_EPS) * gamma + beta


def generator_kernel(
    labels_ref, noise_ref,
    we1_ref, wn1_ref, vec_ref,
    w2_ref, w3_ref,
    w4_hbm_ref, w5_hbm_ref,
    out_ref,
    w4_vmem, w5_vmem, dma_sems,
):
    # Kick off the dominant layer-4/5 weight fetches immediately; they overlap layers 1-3.
    w4_copy = pltpu.make_async_copy(w4_hbm_ref, w4_vmem, dma_sems.at[0])
    w5_copy = pltpu.make_async_copy(w5_hbm_ref, w5_vmem, dma_sems.at[1])
    w4_copy.start()
    w5_copy.start()

    batch = noise_ref.shape[0]
    c_pad = we1_ref.shape[0]
    out_pad = out_ref.shape[1]

    # ---- layer 1: Embedding folded into Linear(64+C -> 128), normalize=False -------------------
    lane_ids = jax.lax.broadcasted_iota(jnp.int32, (batch, c_pad), 1)
    one_hot = (lane_ids == labels_ref[...]).astype(jnp.bfloat16)          # (B, c_pad)
    z = jnp.dot(one_hot, we1_ref[...], preferred_element_type=jnp.float32)
    z = z + jnp.dot(noise_ref[...].astype(jnp.bfloat16), wn1_ref[...],
                    preferred_element_type=jnp.float32)
    h = _leaky_relu(z + vec_ref[0:1, 0:128])                              # + b1

    # ---- layer 2: Linear(128 -> 256) + BN (bias dropped: cancelled by batch-stat BN) -----------
    z = jnp.dot(h.astype(jnp.bfloat16), w2_ref[...], preferred_element_type=jnp.float32)
    h = _leaky_relu(_batchnorm_train_fused(z, vec_ref[1:2, 0:256], vec_ref[2:3, 0:256]))

    # ---- layer 3: Linear(256 -> 512) + BN -------------------------------------------------------
    z = jnp.dot(h.astype(jnp.bfloat16), w3_ref[...], preferred_element_type=jnp.float32)
    h = _leaky_relu(_batchnorm_train_fused(z, vec_ref[3:4, 0:512], vec_ref[4:5, 0:512]))

    # ---- layer 4: Linear(512 -> 1024) + BN (weights arrive via the async copy above) -----------
    w4_copy.wait()
    z = jnp.dot(h.astype(jnp.bfloat16), w4_vmem[...], preferred_element_type=jnp.float32)
    h = _leaky_relu(_batchnorm_train_fused(z, vec_ref[5:6, 0:1024], vec_ref[6:7, 0:1024]))

    # ---- layer 5: Linear(1024 -> out_pad) + Tanh (padded cols are zero -> tanh(0)=0, sliced off)
    w5_copy.wait()
    z = jnp.dot(h.astype(jnp.bfloat16), w5_vmem[...], preferred_element_type=jnp.float32)
    out_ref[...] = jnp.tanh(z + vec_ref[0:1, 128:128 + out_pad])          # + b5 (padded)


def init_params(key, sample_length, classes):
    """Deterministic synthetic parameters matching the PyTorch module (PyTorch layouts)."""
    dims = [(NOISE_DIM + classes, 128), (128, 256), (256, 512), (512, 1024),
            (1024, sample_length)]
    keys = jax.random.split(key, 1 + 2 * len(dims))
    params = {}
    params["emb_table"] = jax.random.normal(keys[0], (classes, classes), jnp.float32)
    for i, (fin, fout) in enumerate(dims):
        bound = 1.0 / jnp.sqrt(jnp.float32(fin))
        params[f"w{i + 1}"] = jax.random.uniform(
            keys[1 + 2 * i], (fout, fin), jnp.float32, -bound, bound)   # PyTorch layout (out, in)
        params[f"b{i + 1}"] = jax.random.uniform(
            keys[2 + 2 * i], (fout,), jnp.float32, -bound, bound)
    for i, fout in zip((2, 3, 4), (256, 512, 1024)):
        params[f"g{i}"] = jnp.ones((fout,), jnp.float32)
        params[f"beta{i}"] = jnp.zeros((fout,), jnp.float32)
    return params


def prepare_kernel_params(params, sample_length, classes):
    """One-time conversion to kernel-ready layout (outside jit).

    Pre-transposed, lane-padded bf16 weights; embedding table folded into layer 1; all tiny f32
    vectors (b1, g/beta 2-4, b5) packed into a single (8, >=1024) buffer (one DMA, static slices).
    """
    out_pad = _round_up(sample_length, LANE)
    c_pad = _round_up(classes, 16)                                   # bf16 sublane-pack friendly

    w1t = params["w1"].T.astype(jnp.float32)                         # (64 + C, 128)
    we1 = params["emb_table"].astype(jnp.float32) @ w1t[:classes, :]  # fold Embedding into layer 1
    we1 = jnp.pad(we1, ((0, c_pad - classes), (0, 0))).astype(jnp.bfloat16)
    wn1 = w1t[classes:, :].astype(jnp.bfloat16)                      # (64, 128)
    w5 = jnp.pad(params["w5"].T,
                 ((0, 0), (0, out_pad - sample_length))).astype(jnp.bfloat16)

    vw = max(1024, 128 + out_pad)
    vecs = jnp.zeros((8, vw), jnp.float32)
    vecs = vecs.at[0, 0:128].set(params["b1"])
    vecs = vecs.at[0, 128:128 + sample_length].set(params["b5"])     # padded tail stays 0
    vecs = vecs.at[1, 0:256].set(params["g2"])
    vecs = vecs.at[2, 0:256].set(params["beta2"])
    vecs = vecs.at[3, 0:512].set(params["g3"])
    vecs = vecs.at[4, 0:512].set(params["beta3"])
    vecs = vecs.at[5, 0:1024].set(params["g4"])
    vecs = vecs.at[6, 0:1024].set(params["beta4"])

    return dict(
        we1=we1, wn1=wn1, vecs=vecs,
        w2=params["w2"].T.astype(jnp.bfloat16),
        w3=params["w3"].T.astype(jnp.bfloat16),
        w4=params["w4"].T.astype(jnp.bfloat16),
        w5=w5,
    )


@functools.partial(jax.jit, static_argnames=("sample_length", "classes"))
def conditional_generator_forward(noise, labels, kparams, *, sample_length, classes):
    del classes  # folded into the prepared params (we1)
    batch = noise.shape[0]
    out_pad = kparams["w5"].shape[1]
    labels2d = labels.reshape(batch, 1).astype(jnp.int32)

    kernel_args = (
        labels2d, noise,
        kparams["we1"], kparams["wn1"], kparams["vecs"],
        kparams["w2"], kparams["w3"],
        kparams["w4"], kparams["w5"],
    )

    vmem = pl.BlockSpec(memory_space=pltpu.MemorySpace.VMEM)
    hbm = pl.BlockSpec(memory_space=pl.ANY)    # w4/w5 stay in HBM; kernel DMAs them explicitly

    out_padded = pl.pallas_call(
        generator_kernel,
        out_shape=jax.ShapeDtypeStruct((batch, out_pad), jnp.float32),
        in_specs=[vmem, vmem, vmem, vmem, vmem, vmem, vmem, hbm, hbm],
        out_specs=vmem,
        scratch_shapes=[
            pltpu.VMEM(kparams["w4"].shape, jnp.bfloat16),
            pltpu.VMEM(kparams["w5"].shape, jnp.bfloat16),
            pltpu.SemaphoreType.DMA((2,)),
        ],
        compiler_params=pltpu.CompilerParams(vmem_limit_bytes=16 << 20),
    )(*kernel_args)

    # TODO(synk): downstream consumers could take the padded lane-dense slab and skip this slice.
    return out_padded[:, :sample_length]


# ------------------------------- references (pure JAX) ------------------------------------------
def reference_forward_bf16(noise, labels, params, kparams, *, sample_length, classes):
    """Exact math mirror of the kernel (same folded layer 1, bf16 operands, f32 accum, fused BN)."""
    c_pad = kparams["we1"].shape[0]
    out_pad = kparams["w5"].shape[1]
    one_hot = jax.nn.one_hot(labels, c_pad, dtype=jnp.bfloat16)
    z = jnp.dot(one_hot, kparams["we1"], preferred_element_type=jnp.float32)
    z = z + jnp.dot(noise.astype(jnp.bfloat16), kparams["wn1"],
                    preferred_element_type=jnp.float32)
    h = _leaky_relu(z + params["b1"])
    for i in (2, 3, 4):
        z = jnp.dot(h.astype(jnp.bfloat16), kparams[f"w{i}"], preferred_element_type=jnp.float32)
        h = _leaky_relu(_batchnorm_train_fused(z, params[f"g{i}"], params[f"beta{i}"]))
    z = jnp.dot(h.astype(jnp.bfloat16), kparams["w5"], preferred_element_type=jnp.float32)
    b5 = jnp.pad(params["b5"], (0, out_pad - sample_length))
    return jnp.tanh(z + b5)[:, :sample_length]


def reference_forward_f32(noise, labels, params, *, sample_length, classes):
    """Faithful f32 mirror of the PyTorch forward (biases kept, training-mode BN)."""
    emb = jnp.take(params["emb_table"], labels, axis=0).reshape(-1, classes)
    x = jnp.concatenate([emb, noise], axis=-1).astype(jnp.float32)

    def lin(h, i):
        return h @ params[f"w{i}"].T + params[f"b{i}"]

    def bn(z, g, b):
        mean = jnp.mean(z, axis=0, keepdims=True)
        var = jnp.mean((z - mean) ** 2, axis=0, keepdims=True)
        return (z - mean) * jax.lax.rsqrt(var + BN_EPS) * g + b

    h = _leaky_relu(lin(x, 1))
    for i in (2, 3, 4):
        h = _leaky_relu(bn(lin(h, i), params[f"g{i}"], params[f"beta{i}"]))
    return jnp.tanh(lin(h, 5))


if __name__ == "__main__":
    SAMPLE_LENGTH = 32
    CLASSES = 10
    BATCH = 8

    key = jax.random.PRNGKey(0)
    k_params, k_noise, k_labels = jax.random.split(key, 3)

    params = init_params(k_params, SAMPLE_LENGTH, CLASSES)
    kparams = prepare_kernel_params(params, SAMPLE_LENGTH, CLASSES)   # one-time, outside jit

    noise = jax.random.normal(k_noise, (BATCH, NOISE_DIM), jnp.float32)
    labels = jax.random.randint(k_labels, (BATCH,), 0, CLASSES, jnp.int32)

    out = conditional_generator_forward(
        noise, labels, kparams, sample_length=SAMPLE_LENGTH, classes=CLASSES)
    out = jax.block_until_ready(out)
    assert out.shape == (BATCH, SAMPLE_LENGTH)

    # Tight check vs. an exact-math mirror of the kernel (same folding + bf16 quantization).
    ref_bf16 = reference_forward_bf16(
        noise, labels, params, kparams, sample_length=SAMPLE_LENGTH, classes=CLASSES)
    assert jnp.allclose(out, ref_bf16, rtol=1e-3, atol=1e-3), "mismatch vs bf16-mirror reference"

    # Looser sanity check vs. full-f32 PyTorch-semantics reference (bf16 weight quantization only).
    ref_f32 = reference_forward_f32(
        noise, labels, params, sample_length=SAMPLE_LENGTH, classes=CLASSES)
    assert jnp.allclose(out, ref_f32, rtol=0.0, atol=0.1), "semantic drift vs f32 reference"

    print("KERNEL_OK")
</pallas_src>

<mosaic_0001>
module attributes {stable_mosaic.version = 11 : i64} {
  func.func @generator_kernel(%arg0: memref<8x1xi32, #tpu.memory_space<vmem>>, %arg1: memref<8x64xf32, #tpu.memory_space<vmem>>, %arg2: memref<16x128xbf16, #tpu.memory_space<vmem>>, %arg3: memref<64x128xbf16, #tpu.memory_space<vmem>>, %arg4: memref<8x1024xf32, #tpu.memory_space<vmem>>, %arg5: memref<128x256xbf16, #tpu.memory_space<vmem>>, %arg6: memref<256x512xbf16, #tpu.memory_space<vmem>>, %arg7: memref<512x1024xbf16, #tpu.memory_space<any>>, %arg8: memref<1024x128xbf16, #tpu.memory_space<any>>, %arg9: memref<8x128xf32, #tpu.memory_space<vmem>>, %arg10: memref<512x1024xbf16, #tpu.memory_space<vmem>>, %arg11: memref<1024x128xbf16, #tpu.memory_space<vmem>>, %arg12: memref<2x!tpu.dma_semaphore, #tpu.memory_space<semaphore_mem>>) attributes {dimension_semantics = [], scalar_prefetch = 0 : i64, scratch_operands = 3 : i64, tpu.core_type = #tpu.core_type<tc>} {
    %c0_i32 = arith.constant 0 : i32
    %0 = tpu.memref_slice %arg12[%c0_i32] : memref<2x!tpu.dma_semaphore, #tpu.memory_space<semaphore_mem>> -> memref<1x!tpu.dma_semaphore, #tpu.memory_space<semaphore_mem>>
    %1 = tpu.memref_squeeze %0 : memref<1x!tpu.dma_semaphore, #tpu.memory_space<semaphore_mem>> -> memref<!tpu.dma_semaphore, #tpu.memory_space<semaphore_mem>>
    tpu.enqueue_dma source(%arg7 : memref<512x1024xbf16, #tpu.memory_space<any>>) target(%arg10 : memref<512x1024xbf16, #tpu.memory_space<vmem>>) target_semaphore(%1 : memref<!tpu.dma_semaphore, #tpu.memory_space<semaphore_mem>>)
    %c1_i32 = arith.constant 1 : i32
    %2 = tpu.memref_slice %arg12[%c1_i32] : memref<2x!tpu.dma_semaphore, #tpu.memory_space<semaphore_mem>> -> memref<1x!tpu.dma_semaphore, #tpu.memory_space<semaphore_mem>>
    %3 = tpu.memref_squeeze %2 : memref<1x!tpu.dma_semaphore, #tpu.memory_space<semaphore_mem>> -> memref<!tpu.dma_semaphore, #tpu.memory_space<semaphore_mem>>
    tpu.enqueue_dma source(%arg8 : memref<1024x128xbf16, #tpu.memory_space<any>>) target(%arg11 : memref<1024x128xbf16, #tpu.memory_space<vmem>>) target_semaphore(%3 : memref<!tpu.dma_semaphore, #tpu.memory_space<semaphore_mem>>)
    %4 = tpu.iota {dimensions = array<i32: 1>} : vector<8x16xi32>
    %c0 = arith.constant 0 : index
    %c0_0 = arith.constant 0 : index
    %5 = vector.load %arg0[%c0, %c0_0] : memref<8x1xi32, #tpu.memory_space<vmem>>, vector<8x1xi32>
    %6 = vector.broadcast %5 : vector<8x1xi32> to vector<8x16xi32>
    %7 = arith.cmpi eq, %4, %6 : vector<8x16xi32>
    %8 = arith.extui %7 : vector<8x16xi1> to vector<8x16xi32>
    %9 = arith.sitofp %8 : vector<8x16xi32> to vector<8x16xf32>
    %10 = arith.truncf %9 : vector<8x16xf32> to vector<8x16xbf16>
    %c0_1 = arith.constant 0 : index
    %c0_2 = arith.constant 0 : index
    %11 = vector.load %arg2[%c0_1, %c0_2] : memref<16x128xbf16, #tpu.memory_space<vmem>>, vector<16x128xbf16>
    %cst = arith.constant dense<0.000000e+00> : vector<8x128xf32>
    %12 = tpu.matmul %10, %11, %cst {dimension_numbers = #tpu.dot_dimension_numbers<[1], [0], [0], [1], [0, 0, 1, 1], [], []>} : vector<8x16xbf16>, vector<16x128xbf16>, vector<8x128xf32> -> vector<8x128xf32>
    %c0_3 = arith.constant 0 : index
    %c0_4 = arith.constant 0 : index
    %13 = vector.load %arg1[%c0_3, %c0_4] : memref<8x64xf32, #tpu.memory_space<vmem>>, vector<8x64xf32>
    %14 = arith.truncf %13 : vector<8x64xf32> to vector<8x64xbf16>
    %c0_5 = arith.constant 0 : index
    %c0_6 = arith.constant 0 : index
    %15 = vector.load %arg3[%c0_5, %c0_6] : memref<64x128xbf16, #tpu.memory_space<vmem>>, vector<64x128xbf16>
    %cst_7 = arith.constant dense<0.000000e+00> : vector<8x128xf32>
    %16 = tpu.matmul %14, %15, %cst_7 {dimension_numbers = #tpu.dot_dimension_numbers<[1], [0], [0], [1], [0, 0, 1, 1], [], []>} : vector<8x64xbf16>, vector<64x128xbf16>, vector<8x128xf32> -> vector<8x128xf32>
    %17 = arith.addf %12, %16 : vector<8x128xf32>
    %c0_8 = arith.constant 0 : index
    %c0_9 = arith.constant 0 : index
    %18 = vector.load %arg4[%c0_8, %c0_9] : memref<8x1024xf32, #tpu.memory_space<vmem>>, vector<1x128xf32>
    %19 = vector.broadcast %18 : vector<1x128xf32> to vector<8x128xf32>
    %20 = arith.addf %17, %19 : vector<8x128xf32>
    %cst_10 = arith.constant 0.000000e+00 : f32
    %21 = vector.broadcast %cst_10 : f32 to vector<8x128xf32>
    %22 = arith.cmpf ogt, %20, %21 : vector<8x128xf32>
    %cst_11 = arith.constant 2.000000e-01 : f32
    %23 = vector.broadcast %cst_11 : f32 to vector<8x128xf32>
    %24 = arith.mulf %23, %20 : vector<8x128xf32>
    %25 = arith.select %22, %20, %24 : vector<8x128xi1>, vector<8x128xf32>
    %26 = arith.truncf %25 : vector<8x128xf32> to vector<8x128xbf16>
    %c0_12 = arith.constant 0 : index
    %c0_13 = arith.constant 0 : index
    %27 = vector.load %arg5[%c0_12, %c0_13] : memref<128x256xbf16, #tpu.memory_space<vmem>>, vector<128x256xbf16>
    %cst_14 = arith.constant dense<0.000000e+00> : vector<8x256xf32>
    %28 = tpu.matmul %26, %27, %cst_14 {dimension_numbers = #tpu.dot_dimension_numbers<[1], [0], [0], [1], [0, 0, 1, 1], [], []>} : vector<8x128xbf16>, vector<128x256xbf16>, vector<8x256xf32> -> vector<8x256xf32>
    %c1 = arith.constant 1 : index
    %c0_15 = arith.constant 0 : index
    %29 = vector.load %arg4[%c1, %c0_15] : memref<8x1024xf32, #tpu.memory_space<vmem>>, vector<1x256xf32>
    %c2 = arith.constant 2 : index
    %c0_16 = arith.constant 0 : index
    %30 = vector.load %arg4[%c2, %c0_16] : memref<8x1024xf32, #tpu.memory_space<vmem>>, vector<1x256xf32>
    %cst_17 = arith.constant dense<0.000000e+00> : vector<256xf32>
    %31 = vector.multi_reduction <add>, %28, %cst_17 [0] : vector<8x256xf32> to vector<256xf32>
    %32 = vector.shape_cast %31 : vector<256xf32> to vector<1x256xf32>
    %33 = arith.mulf %28, %28 : vector<8x256xf32>
    %cst_18 = arith.constant dense<0.000000e+00> : vector<256xf32>
    %34 = vector.multi_reduction <add>, %33, %cst_18 [0] : vector<8x256xf32> to vector<256xf32>
    %35 = vector.shape_cast %34 : vector<256xf32> to vector<1x256xf32>
    %cst_19 = arith.constant 1.250000e-01 : f32
    %36 = vector.broadcast %cst_19 : f32 to vector<1x256xf32>
    %37 = arith.mulf %32, %36 : vector<1x256xf32>
    %cst_20 = arith.constant 1.250000e-01 : f32
    %38 = vector.broadcast %cst_20 : f32 to vector<1x256xf32>
    %39 = arith.mulf %35, %38 : vector<1x256xf32>
    %40 = arith.mulf %37, %37 : vector<1x256xf32>
    %41 = arith.subf %39, %40 : vector<1x256xf32>
    %42 = vector.broadcast %37 : vector<1x256xf32> to vector<8x256xf32>
    %43 = arith.subf %28, %42 : vector<8x256xf32>
    %cst_21 = arith.constant 8.000000e-01 : f32
    %44 = vector.broadcast %cst_21 : f32 to vector<1x256xf32>
    %45 = arith.addf %41, %44 : vector<1x256xf32>
    %46 = math.rsqrt %45 : vector<1x256xf32>
    %47 = vector.broadcast %46 : vector<1x256xf32> to vector<8x256xf32>
    %48 = arith.mulf %43, %47 : vector<8x256xf32>
    %49 = vector.broadcast %29 : vector<1x256xf32> to vector<8x256xf32>
    %50 = arith.mulf %48, %49 : vector<8x256xf32>
    %51 = vector.broadcast %30 : vector<1x256xf32> to vector<8x256xf32>
    %52 = arith.addf %50, %51 : vector<8x256xf32>
    %cst_22 = arith.constant 0.000000e+00 : f32
    %53 = vector.broadcast %cst_22 : f32 to vector<8x256xf32>
    %54 = arith.cmpf ogt, %52, %53 : vector<8x256xf32>
    %cst_23 = arith.constant 2.000000e-01 : f32
    %55 = vector.broadcast %cst_23 : f32 to vector<8x256xf32>
    %56 = arith.mulf %55, %52 : vector<8x256xf32>
    %57 = arith.select %54, %52, %56 : vector<8x256xi1>, vector<8x256xf32>
    %58 = arith.truncf %57 : vector<8x256xf32> to vector<8x256xbf16>
    %c0_24 = arith.constant 0 : index
    %c0_25 = arith.constant 0 : index
    %59 = vector.load %arg6[%c0_24, %c0_25] : memref<256x512xbf16, #tpu.memory_space<vmem>>, vector<256x512xbf16>
    %cst_26 = arith.constant dense<0.000000e+00> : vector<8x512xf32>
    %60 = tpu.matmul %58, %59, %cst_26 {dimension_numbers = #tpu.dot_dimension_numbers<[1], [0], [0], [1], [0, 0, 1, 1], [], []>} : vector<8x256xbf16>, vector<256x512xbf16>, vector<8x512xf32> -> vector<8x512xf32>
    %c3 = arith.constant 3 : index
    %c0_27 = arith.constant 0 : index
    %61 = vector.load %arg4[%c3, %c0_27] : memref<8x1024xf32, #tpu.memory_space<vmem>>, vector<1x512xf32>
    %c4 = arith.constant 4 : index
    %c0_28 = arith.constant 0 : index
    %62 = vector.load %arg4[%c4, %c0_28] : memref<8x1024xf32, #tpu.memory_space<vmem>>, vector<1x512xf32>
    %cst_29 = arith.constant dense<0.000000e+00> : vector<512xf32>
    %63 = vector.multi_reduction <add>, %60, %cst_29 [0] : vector<8x512xf32> to vector<512xf32>
    %64 = vector.shape_cast %63 : vector<512xf32> to vector<1x512xf32>
    %65 = arith.mulf %60, %60 : vector<8x512xf32>
    %cst_30 = arith.constant dense<0.000000e+00> : vector<512xf32>
    %66 = vector.multi_reduction <add>, %65, %cst_30 [0] : vector<8x512xf32> to vector<512xf32>
    %67 = vector.shape_cast %66 : vector<512xf32> to vector<1x512xf32>
    %cst_31 = arith.constant 1.250000e-01 : f32
    %68 = vector.broadcast %cst_31 : f32 to vector<1x512xf32>
    %69 = arith.mulf %64, %68 : vector<1x512xf32>
    %cst_32 = arith.constant 1.250000e-01 : f32
    %70 = vector.broadcast %cst_32 : f32 to vector<1x512xf32>
    %71 = arith.mulf %67, %70 : vector<1x512xf32>
    %72 = arith.mulf %69, %69 : vector<1x512xf32>
    %73 = arith.subf %71, %72 : vector<1x512xf32>
    %74 = vector.broadcast %69 : vector<1x512xf32> to vector<8x512xf32>
    %75 = arith.subf %60, %74 : vector<8x512xf32>
    %cst_33 = arith.constant 8.000000e-01 : f32
    %76 = vector.broadcast %cst_33 : f32 to vector<1x512xf32>
    %77 = arith.addf %73, %76 : vector<1x512xf32>
    %78 = math.rsqrt %77 : vector<1x512xf32>
    %79 = vector.broadcast %78 : vector<1x512xf32> to vector<8x512xf32>
    %80 = arith.mulf %75, %79 : vector<8x512xf32>
    %81 = vector.broadcast %61 : vector<1x512xf32> to vector<8x512xf32>
    %82 = arith.mulf %80, %81 : vector<8x512xf32>
    %83 = vector.broadcast %62 : vector<1x512xf32> to vector<8x512xf32>
    %84 = arith.addf %82, %83 : vector<8x512xf32>
    %cst_34 = arith.constant 0.000000e+00 : f32
    %85 = vector.broadcast %cst_34 : f32 to vector<8x512xf32>
    %86 = arith.cmpf ogt, %84, %85 : vector<8x512xf32>
    %cst_35 = arith.constant 2.000000e-01 : f32
    %87 = vector.broadcast %cst_35 : f32 to vector<8x512xf32>
    %88 = arith.mulf %87, %84 : vector<8x512xf32>
    %89 = arith.select %86, %84, %88 : vector<8x512xi1>, vector<8x512xf32>
    %c0_i32_36 = arith.constant 0 : i32
    %90 = tpu.memref_slice %arg12[%c0_i32_36] : memref<2x!tpu.dma_semaphore, #tpu.memory_space<semaphore_mem>> -> memref<1x!tpu.dma_semaphore, #tpu.memory_space<semaphore_mem>>
    %91 = tpu.memref_squeeze %90 : memref<1x!tpu.dma_semaphore, #tpu.memory_space<semaphore_mem>> -> memref<!tpu.dma_semaphore, #tpu.memory_space<semaphore_mem>>
    tpu.wait_dma2 semaphore(%91 : memref<!tpu.dma_semaphore, #tpu.memory_space<semaphore_mem>>) src(%arg7 : memref<512x1024xbf16, #tpu.memory_space<any>>) dst(%arg10 : memref<512x1024xbf16, #tpu.memory_space<vmem>>)
    %92 = arith.truncf %89 : vector<8x512xf32> to vector<8x512xbf16>
    %c0_37 = arith.constant 0 : index
    %c0_38 = arith.constant 0 : index
    %93 = vector.load %arg10[%c0_37, %c0_38] : memref<512x1024xbf16, #tpu.memory_space<vmem>>, vector<512x1024xbf16>
    %cst_39 = arith.constant dense<0.000000e+00> : vector<8x1024xf32>
    %94 = tpu.matmul %92, %93, %cst_39 {dimension_numbers = #tpu.dot_dimension_numbers<[1], [0], [0], [1], [0, 0, 1, 1], [], []>} : vector<8x512xbf16>, vector<512x1024xbf16>, vector<8x1024xf32> -> vector<8x1024xf32>
    %c5 = arith.constant 5 : index
    %c0_40 = arith.constant 0 : index
    %95 = vector.load %arg4[%c5, %c0_40] : memref<8x1024xf32, #tpu.memory_space<vmem>>, vector<1x1024xf32>
    %c6 = arith.constant 6 : index
    %c0_41 = arith.constant 0 : index
    %96 = vector.load %arg4[%c6, %c0_41] : memref<8x1024xf32, #tpu.memory_space<vmem>>, vector<1x1024xf32>
    %cst_42 = arith.constant dense<0.000000e+00> : vector<1024xf32>
    %97 = vector.multi_reduction <add>, %94, %cst_42 [0] : vector<8x1024xf32> to vector<1024xf32>
    %98 = vector.shape_cast %97 : vector<1024xf32> to vector<1x1024xf32>
    %99 = arith.mulf %94, %94 : vector<8x1024xf32>
    %cst_43 = arith.constant dense<0.000000e+00> : vector<1024xf32>
    %100 = vector.multi_reduction <add>, %99, %cst_43 [0] : vector<8x1024xf32> to vector<1024xf32>
    %101 = vector.shape_cast %100 : vector<1024xf32> to vector<1x1024xf32>
    %cst_44 = arith.constant 1.250000e-01 : f32
    %102 = vector.broadcast %cst_44 : f32 to vector<1x1024xf32>
    %103 = arith.mulf %98, %102 : vector<1x1024xf32>
    %cst_45 = arith.constant 1.250000e-01 : f32
    %104 = vector.broadcast %cst_45 : f32 to vector<1x1024xf32>
    %105 = arith.mulf %101, %104 : vector<1x1024xf32>
    %106 = arith.mulf %103, %103 : vector<1x1024xf32>
    %107 = arith.subf %105, %106 : vector<1x1024xf32>
    %108 = vector.broadcast %103 : vector<1x1024xf32> to vector<8x1024xf32>
    %109 = arith.subf %94, %108 : vector<8x1024xf32>
    %cst_46 = arith.constant 8.000000e-01 : f32
    %110 = vector.broadcast %cst_46 : f32 to vector<1x1024xf32>
    %111 = arith.addf %107, %110 : vector<1x1024xf32>
    %112 = math.rsqrt %111 : vector<1x1024xf32>
    %113 = vector.broadcast %112 : vector<1x1024xf32> to vector<8x1024xf32>
    %114 = arith.mulf %109, %113 : vector<8x1024xf32>
    %115 = vector.broadcast %95 : vector<1x1024xf32> to vector<8x1024xf32>
    %116 = arith.mulf %114, %115 : vector<8x1024xf32>
    %117 = vector.broadcast %96 : vector<1x1024xf32> to vector<8x1024xf32>
    %118 = arith.addf %116, %117 : vector<8x1024xf32>
    %cst_47 = arith.constant 0.000000e+00 : f32
    %119 = vector.broadcast %cst_47 : f32 to vector<8x1024xf32>
    %120 = arith.cmpf ogt, %118, %119 : vector<8x1024xf32>
    %cst_48 = arith.constant 2.000000e-01 : f32
    %121 = vector.broadcast %cst_48 : f32 to vector<8x1024xf32>
    %122 = arith.mulf %121, %118 : vector<8x1024xf32>
    %123 = arith.select %120, %118, %122 : vector<8x1024xi1>, vector<8x1024xf32>
    %c1_i32_49 = arith.constant 1 : i32
    %124 = tpu.memref_slice %arg12[%c1_i32_49] : memref<2x!tpu.dma_semaphore, #tpu.memory_space<semaphore_mem>> -> memref<1x!tpu.dma_semaphore, #tpu.memory_space<semaphore_mem>>
    %125 = tpu.memref_squeeze %124 : memref<1x!tpu.dma_semaphore, #tpu.memory_space<semaphore_mem>> -> memref<!tpu.dma_semaphore, #tpu.memory_space<semaphore_mem>>
    tpu.wait_dma2 semaphore(%125 : memref<!tpu.dma_semaphore, #tpu.memory_space<semaphore_mem>>) src(%arg8 : memref<1024x128xbf16, #tpu.memory_space<any>>) dst(%arg11 : memref<1024x128xbf16, #tpu.memory_space<vmem>>)
    %126 = arith.truncf %123 : vector<8x1024xf32> to vector<8x1024xbf16>
    %c0_50 = arith.constant 0 : index
    %c0_51 = arith.constant 0 : index
    %127 = vector.load %arg11[%c0_50, %c0_51] : memref<1024x128xbf16, #tpu.memory_space<vmem>>, vector<1024x128xbf16>
    %cst_52 = arith.constant dense<0.000000e+00> : vector<8x128xf32>
    %128 = tpu.matmul %126, %127, %cst_52 {dimension_numbers = #tpu.dot_dimension_numbers<[1], [0], [0], [1], [0, 0, 1, 1], [], []>} : vector<8x1024xbf16>, vector<1024x128xbf16>, vector<8x128xf32> -> vector<8x128xf32>
    %c0_53 = arith.constant 0 : index
    %c128 = arith.constant 128 : index
    %129 = vector.load %arg4[%c0_53, %c128] : memref<8x1024xf32, #tpu.memory_space<vmem>>, vector<1x128xf32>
    %130 = vector.broadcast %129 : vector<1x128xf32> to vector<8x128xf32>
    %131 = arith.addf %128, %130 : vector<8x128xf32>
    %132 = math.tanh %131 : vector<8x128xf32>
    %c0_54 = arith.constant 0 : index
    %c0_55 = arith.constant 0 : index
    %133 = vector.load %arg9[%c0_54, %c0_55] : memref<8x128xf32, #tpu.memory_space<vmem>>, vector<8x128xf32>
    tpu.vector_store %arg9[%c0_54, %c0_55], %132 {strides = array<i32>} : memref<8x128xf32, #tpu.memory_space<vmem>>, vector<8x128xf32>,
    return
  }
}

</mosaic_0001>

<bundles_post_ra>
// kernel: conditional_generator_forward.1
= control target key start
LH: loop header
LB: loop body
LE: loop exit
PB: predicated region body
PF: predicated region fallthrough
CT: control target
= control target key end

     0   :  { %14 = vsyncpa [#allocation6], 0  ;;  %s3214_s0 = inlined_call_operand.vmem [shape: s32[8,1], index: 0, kind: input, shape index: {}]   ;;  %s3215_s1 = inlined_call_operand.vmem [shape: f32[8,64], index: 1, kind: input, shape index: {}]   ;;  %s3216_s2 = inlined_call_operand.hbm [shape: bf16[16,128], index: 2, kind: input, shape index: {}]   ;;  %s3217_s3 = inlined_call_operand.vmem [shape: bf16[64,128], index: 3, kind: input, shape index: {}]   ;;  %s3218_s4 = inlined_call_operand.hbm [shape: f32[8,1024], index: 4, kind: input, shape index: {}]   ;;  %s3219_s5 = inlined_call_operand.hbm [shape: bf16[128,256], index: 5, kind: input, shape index: {}]   ;;  %s3220_s6 = inlined_call_operand.hbm [shape: bf16[256,512], index: 6, kind: input, shape index: {}]   ;;  %s3221_s7 = inlined_call_operand.hbm [shape: bf16[512,1024], index: 7, kind: input, shape index: {}]   ;;  %s3222_s8 = inlined_call_operand.hbm [shape: bf16[1024,128], index: 8, kind: input, shape index: {}]   ;;  %s3223_s9 = inlined_call_operand.hbm [shape: f32[8,128], index: 9, kind: output, shape index: {}]  }
   0x1   :  { %15 = vsyncpa [#allocation9], 0 }
   0x2   :  { %16 = vsyncpa [#allocation12], 0 }
   0x3   :  { %17 = vsyncpa [#allocation7], 0  ;;  %s2810_s30 = smov [#allocation8]   ;;  %s2811_s11 = smov [#allocation5]  }
   0x4   :  { %s42_s10 = sshll.u32 %s2810_s30, 4  ;;  %s27_s12 = sshll.u32 %s2811_s11, 4  ;;  %s43_s10 = int_to_ptr.vmem [resolvable:$true] %s42_s10  ;;  %s2881_s12 = int_to_ptr.vmem [resolvable:$true] %s27_s12 }
   0x5   :  { %s2666_s15 = scalar_lea.hbm %s3218_s4, 1024 }
   0x6   :  { %p2667_p0 = scmp.ne.s32.totalorder %s3218_s4, %s2666_s15  ;;  %p2670_p1 = scmp.lt.u32.totalorder %s2666_s15, %s3218_s4 }
   0x8   :  { %p2672_p2 = pnand %p2670_p1, %p2667_p0 }
   0xa   :  { %2675 = shalt.err (!%p2672_p2)
}
   0xb   :  { %s2676_s20 = scalar_lea.vmem %s43_s10, 1024  ;;  %p2681_p4 = scmp.lt.s32.totalorder %s43_s10, %s43_s10 }
   0xc   :  { %p2677_p3 = scmp.ne.s32.totalorder %s43_s10, %s2676_s20  ;;  %p2682_p5 = scmp.lt.s32.totalorder %s2676_s20, %s2676_s20 }
   0xe   :  { %p2683_p6 = por %p2682_p5, %p2681_p4 }
  0x10   :  { %p2684_p7 = pnand %p2683_p6, %p2677_p3 }
  0x12   :  { %2687 = shalt.err (!%p2684_p7)
}
  0x13   :  { %45 = dma.hbm_to_vmem [thread:$0]  %s3218_s4, 1024, %s43_s10, [#allocation9]  }
  0x14   :  { %s2688_s25 = scalar_lea.hbm %s3216_s2, 128 }
  0x15   :  { %p2689_p8 = scmp.ne.s32.totalorder %s3216_s2, %s2688_s25  ;;  %p2692_p9 = scmp.lt.u32.totalorder %s2688_s25, %s3216_s2 }
  0x17   :  { %p2694_p10 = pnand %p2692_p9, %p2689_p8 }
  0x19   :  { %2697 = shalt.err (!%p2694_p10)
}
  0x1a   :  { %s2698_s30 = scalar_lea.vmem %s2881_s12, 128  ;;  %p2703_p12 = scmp.lt.s32.totalorder %s2881_s12, %s2881_s12 }
  0x1b   :  { %p2699_p11 = scmp.ne.s32.totalorder %s2881_s12, %s2698_s30  ;;  %p2704_p13 = scmp.lt.s32.totalorder %s2698_s30, %s2698_s30 }
  0x1d   :  { %p2705_p0 = por %p2704_p13, %p2703_p12 }
  0x1f   :  { %p2706_p1 = pnand %p2705_p0, %p2699_p11 }
  0x21   :  { %2709 = shalt.err (!%p2706_p1)
}
  0x22   :  { %s2812_s4 = smov 64   ;;  %s2813_s10 = smov 4  }
  0x23   :  { %33 = dma.hbm_to_vmem [thread:$0]  %s3216_s2, 128, %s2881_s12, [#allocation6], %s2812_s4, %s2812_s4, %s2813_s10  }
  0x24   :  { %s2814_s14 = smov [#allocation10]   ;;  %s2710_s18 = scalar_lea.hbm %s3219_s5, 2048 }
  0x25   :  { %s51_s15 = sshll.u32 %s2814_s14, 4  ;;  %p2711_p2 = scmp.ne.s32.totalorder %s3219_s5, %s2710_s18  ;;  %s52_s15 = int_to_ptr.vmem [resolvable:$true] %s51_s15 }
  0x26   :  { %p2714_p3 = scmp.lt.u32.totalorder %s2710_s18, %s3219_s5 }
  0x28   :  { %p2716_p4 = pnand %p2714_p3, %p2711_p2 }
  0x2a   :  { %2719 = shalt.err (!%p2716_p4)
}
  0x2b   :  { %s2720_s23 = scalar_lea.vmem %s52_s15, 2048  ;;  %p2725_p6 = scmp.lt.s32.totalorder %s52_s15, %s52_s15 }
  0x2c   :  { %p2721_p5 = scmp.ne.s32.totalorder %s52_s15, %s2720_s23  ;;  %p2726_p7 = scmp.lt.s32.totalorder %s2720_s23, %s2720_s23 }
  0x2e   :  { %p2727_p8 = por %p2726_p7, %p2725_p6 }
  0x30   :  { %p2728_p9 = pnand %p2727_p8, %p2721_p5 }
  0x32   :  { %2731 = shalt.err (!%p2728_p9)
}
  0x33   :  { %s2815_s2 = smov 128   ;;  %s2816_s12 = smov 8  }
  0x34   :  { %57 = dma.hbm_to_vmem [thread:$0]  %s3219_s5, 2048, %s52_s15, [#allocation9], %s2815_s2, %s2815_s2, %s2816_s12  }
  0x35   :  { %s2817_s26 = smov [#allocation11]   ;;  %s2732_s30 = scalar_lea.hbm %s3220_s6, 8192 }
  0x36   :  { %s63_s27 = sshll.u32 %s2817_s26, 4  ;;  %p2733_p10 = scmp.ne.s32.totalorder %s3220_s6, %s2732_s30  ;;  %s64_s27 = int_to_ptr.vmem [resolvable:$true] %s63_s27 }
  0x37   :  { %p2736_p11 = scmp.lt.u32.totalorder %s2732_s30, %s3220_s6 }
  0x39   :  { %p2738_p12 = pnand %p2736_p11, %p2733_p10 }
  0x3b   :  { %2741 = shalt.err (!%p2738_p12)
}
  0x3c   :  { %s2742_s17 = scalar_lea.vmem %s64_s27, 8192  ;;  %p2747_p0 = scmp.lt.s32.totalorder %s64_s27, %s64_s27 }
  0x3d   :  { %p2743_p13 = scmp.ne.s32.totalorder %s64_s27, %s2742_s17  ;;  %p2748_p1 = scmp.lt.s32.totalorder %s2742_s17, %s2742_s17 }
  0x3f   :  { %p2749_p2 = por %p2748_p1, %p2747_p0 }
  0x41   :  { %p2750_p3 = pnand %p2749_p2, %p2743_p13 }
  0x43   :  { %2753 = shalt.err (!%p2750_p3)
}
  0x44   :  { %s2818_s5 = smov 256   ;;  %s2819_s15 = smov 16  }
  0x45   :  { %69 = dma.hbm_to_vmem [thread:$0]  %s3220_s6, 8192, %s64_s27, [#allocation12], %s2818_s5, %s2818_s5, %s2819_s15  }
  0x46   :  { %2798 = dma.done.wait [#allocation6], 128  }
  0x47   :  { %2799 = vsyncadd [#allocation6], 4294967168 }
  0x48   :  { %2800 = dma.done.wait [#allocation9], 3072  }
  0x49   :  { %2801 = vsyncadd [#allocation9], 4294964224 }
  0x4a   :  { %2802 = dma.done.wait [#allocation12], 8192  }
  0x4b   :  { %2803 = vsyncadd [#allocation12], 4294959104  ;;  %s87_s20 = sld [smem:[#allocation0]]   ;;  %s2820_s21 = smov 1024   ;;  %v2821_v0 = vmov 0   ;;  %v2822_v1 = vmov 0.0   ;;  %v130_v22 = vlaneseq }
  0x4c   :  { %99 = sst [smem:[#allocation15]] %s2820_s21  ;;  %2510 = vset.pattern.permute.xlu0 %v2821_v0  ;;  %2455 = vmatprep.subr.bf16.mxu0 %v2822_v1  ;;  %vm2823_vm0 = vmmov 0   ;;  %s2824_s6 = smov [#allocation2]   ;;  %vm176_vm1 = vcmask 523264   ;;  %vm226_vm3 = vcmask 130048  }
  0x4d   :  { %101 = sst [smem:[#allocation15 + $0x1]] %s2820_s21  ;;  %2463 = vmatprep.mubr.msk.bf16.mxu0 %vm2823_vm0, %v2822_v1  ;;  %404 = vmatprep.mubr.bf16.mxu1 %v2821_v0  ;;  %s95_s22 = sshll.u32 %s2824_s6, 4  ;;  %v131_v23 = vand.u32 127, %v130_v22  ;;  %s96_s22 = int_to_ptr.vmem [resolvable:$true] %s95_s22 }
  0x4e   :  { %103 = sst [smem:[#allocation15 + $0x2]] %s2816_s12  ;;  %s2825_s23 = smov 2  }
  0x4f   :  { %105 = sst [smem:[#allocation15 + $0x3]] %s2812_s4  ;;  %s2826_s25 = smov 512  }
  0x50   :  { %107 = sst [smem:[#allocation15 + $0x4]] %s2815_s2  ;;  %s2827_s27 = smov [#allocation4]  }
  0x51   :  { %109 = sst [smem:[#allocation15 + $0x5]] %s2825_s23  ;;  %s2268_s24 = sshll.u32 %s87_s20, 26 }
  0x52   :  { %111 = sst [smem:[#allocation15 + $0x6]] %s2826_s25  ;;  %s2269_s26 = sadd.s32 134217728, %s2268_s24 }
  0x53   :  { %113 = sst [smem:[#allocation15 + $0x7]] %s2812_s4  ;;  %s2828_s28 = smov [#allocation14]  }
  0x54   :  { %115 = sst [smem:[#allocation15 + $0x8]] %s2813_s10  ;;  %s2754_s19 = scalar_lea.hbm %s3222_s8, 8192 }
  0x55   :  { %117 = dma.general %s3221_s7, 32768, %s96_s22, %s2827_s27, %s2828_s28, [#allocation15], %s2269_s26, 0  }
  0x56   :  { %v132_v2 = vld [vmem:[%s3214_s0] sm:$0xff]  ;;  %v2512_v4 = vld [vmem:[%s3217_s3 + $0x8] sm:$0xff]   ;;  %v2513_v5 = vld [vmem:[%s3217_s3 + $0x10] sm:$0xff]   ;;  %p2755_p4 = scmp.ne.s32.totalorder %s3222_s8, %s2754_s19  ;;  %p2758_p5 = scmp.lt.u32.totalorder %s2754_s19, %s3222_s8 }
  0x57   :  { %134 = vperm.xlu0 %2510, %v132_v2   ;;  %v2511_v3 = vld [vmem:[%s3217_s3] sm:$0xff]   ;;  %v2516_v6 = vld [vmem:[#allocation10 + $0x4] ss:$8 sps:$4 sm:$0xff]   ;;  %v2518_v7 = vld [vmem:[#allocation10] ss:$8 sps:$4 sm:$0xff]  }
  0x58   :  { %2456 = vmatpush3.bf16.msra.mxu0 %v2511_v3  ;;  %v2519_v8 = vld [vmem:[#allocation10 + $0x14] ss:$8 sps:$4 sm:$0xff]   ;;  %372 = vmatprep.subr.bf16.mxu1 %v2516_v6  ;;  %v2521_v11 = vld [vmem:[#allocation10 + $0x10] ss:$8 sps:$4 sm:$0xff]   ;;  %v2522_v12 = vld [vmem:[#allocation10 + $0x24] ss:$8 sps:$4 sm:$0xff]   ;;  %p2760_p6 = pnand %p2758_p5, %p2755_p4 }
  0x59   :  { %2457 = vmatprep.subr.bf16.mxu0 %v2822_v1  ;;  %v2514_v9 = vld [vmem:[%s3217_s3 + $0x18] sm:$0xff]   ;;  %v142_v10 = vld [vmem:[%s3215_s1] sm:$0xff]  ;;  %373 = vmatpush1.bf16.msra.mxu1 %v2518_v7  ;;  %v2524_v13 = vld [vmem:[#allocation10 + $0x20] ss:$8 sps:$4 sm:$0xff]   ;;  %s2829_s1 = smov [#allocation3]  }
  0x5a   :  { %374 = vmatprep.subr.bf16.mxu1 %v2519_v8  ;;  %v2515_v14 = vld [vmem:[#allocation5] sm:$0xff]   ;;  %v143_v15 = vpack.c.bf16 %v142_v10, %v142_v10  ;;  %v2528_v18 = vld [vmem:[#allocation10 + $0x44] ss:$8 sps:$4 sm:$0xff]   ;;  %v2530_v19 = vld [vmem:[#allocation10 + $0x40] ss:$8 sps:$4 sm:$0xff]   ;;  %s126_s3 = sshll.u32 %s2829_s1, 4  ;;  %s127_s3 = int_to_ptr.vmem [resolvable:$true] %s126_s3 }
  0x5b   :  { %v2525_v16 = vld [vmem:[#allocation10 + $0x34] ss:$8 sps:$4 sm:$0xff]   ;;  %v2527_v17 = vld [vmem:[#allocation10 + $0x30] ss:$8 sps:$4 sm:$0xff]   ;;  %v2534_v27 = vld [vmem:[#allocation10 + $0x64] ss:$8 sps:$4 sm:$0xff]  }
  0x5c   :  { %2458 = vmatpush3.bf16.msra.mxu0 %v2512_v4  ;;  %v2531_v20 = vld [vmem:[#allocation10 + $0x54] ss:$8 sps:$4 sm:$0xff]   ;;  %v2533_v21 = vld [vmem:[#allocation10 + $0x50] ss:$8 sps:$4 sm:$0xff]   ;;  %v2536_v28 = vld [vmem:[#allocation10 + $0x60] ss:$8 sps:$4 sm:$0xff]  }
  0x5d   :  { %2459 = vmatprep.subr.bf16.mxu0 %v2822_v1  ;;  %375 = vmatpush1.bf16.msra.mxu1 %v2521_v11  ;;  %v2537_v29 = vld [vmem:[#allocation10 + $0x74] ss:$8 sps:$4 sm:$0xff]   ;;  %v2539_v30 = vld [vmem:[#allocation10 + $0x70] ss:$8 sps:$4 sm:$0xff]   ;;  %v270_v47 = vld [vmem:[#allocation8] ss:$0 sm:$0xff] }
  0x5e   :  { %376 = vmatprep.subr.bf16.mxu1 %v2522_v12  ;;  %v2540_v31 = vld [vmem:[#allocation11] ss:$16 sps:$4 sm:$0xff]   ;;  %v2542_v32 = vld [vmem:[#allocation11 + $0x4] ss:$16 sps:$4 sm:$0xff]   ;;  %v2545_v33 = vld [vmem:[#allocation11 + $0xc] ss:$16 sps:$4 sm:$0xff]  }
  0x5f   :  { %v2548_v34 = vld [vmem:[#allocation11 + $0x24] ss:$16 sps:$4 sm:$0xff]   ;;  %v2546_v36 = vld [vmem:[#allocation11 + $0x20] ss:$16 sps:$4 sm:$0xff]   ;;  %v2543_v55 = vld [vmem:[#allocation11 + $0x8] ss:$16 sps:$4 sm:$0xff]  }
  0x60   :  { %2460 = vmatpush3.bf16.msra.mxu0 %v2513_v5  ;;  %v2554_v39 = vld [vmem:[#allocation11 + $0x44] ss:$16 sps:$4 sm:$0xff]   ;;  %v2552_v41 = vld [vmem:[#allocation11 + $0x40] ss:$16 sps:$4 sm:$0xff]   ;;  %v2551_v57 = vld [vmem:[#allocation11 + $0x2c] ss:$16 sps:$4 sm:$0xff]  }
  0x61   :  { %2461 = vmatprep.subr.bf16.mxu0 %v2822_v1  ;;  %377 = vmatpush1.bf16.msra.mxu1 %v2524_v13  ;;  %v2560_v42 = vld [vmem:[#allocation11 + $0x64] ss:$16 sps:$4 sm:$0xff]   ;;  %v2558_v43 = vld [vmem:[#allocation11 + $0x60] ss:$16 sps:$4 sm:$0xff]   ;;  %v2549_v58 = vld [vmem:[#allocation11 + $0x28] ss:$16 sps:$4 sm:$0xff]  }
  0x62   :  { %378 = vmatprep.subr.bf16.mxu1 %v2525_v16  ;;  %v2566_v44 = vld [vmem:[#allocation11 + $0x84] ss:$16 sps:$4 sm:$0xff]   ;;  %v2564_v45 = vld [vmem:[#allocation11 + $0x80] ss:$16 sps:$4 sm:$0xff]   ;;  %v2557_v59 = vld [vmem:[#allocation11 + $0x4c] ss:$16 sps:$4 sm:$0xff]  }
  0x63   :  { %v2555_v60 = vld [vmem:[#allocation11 + $0x48] ss:$16 sps:$4 sm:$0xff]   ;;  %v2563_v61 = vld [vmem:[#allocation11 + $0x6c] ss:$16 sps:$4 sm:$0xff]   ;;  %v2570_v3 = vld [vmem:[#allocation11 + $0xa0] ss:$16 sps:$4 sm:$0xff]  }
  0x64   :  { %2462 = vmatpush3.bf16.msra.mxu0 %v2514_v9  ;;  %v2561_v62 = vld [vmem:[#allocation11 + $0x68] ss:$16 sps:$4 sm:$0xff]   ;;  %v2569_v63 = vld [vmem:[#allocation11 + $0x8c] ss:$16 sps:$4 sm:$0xff]   ;;  %v2578_v5 = vld [vmem:[#allocation11 + $0xc4] ss:$16 sps:$4 sm:$0xff]  }
  0x65   :  { %2467 = vmatprep.subr.bf16.mxu0 %v2822_v1  ;;  %379 = vmatpush1.bf16.msra.mxu1 %v2527_v17  ;;  %v2567_v0 = vld [vmem:[#allocation11 + $0x88] ss:$16 sps:$4 sm:$0xff]   ;;  %v2575_v2 = vld [vmem:[#allocation11 + $0xac] ss:$16 sps:$4 sm:$0xff]   ;;  %v2576_v7 = vld [vmem:[#allocation11 + $0xc0] ss:$16 sps:$4 sm:$0xff]  }
  0x66   :  { %380 = vmatprep.subr.bf16.mxu1 %v2528_v18  ;;  %v2573_v4 = vld [vmem:[#allocation11 + $0xa8] ss:$16 sps:$4 sm:$0xff]   ;;  %v2581_v6 = vld [vmem:[#allocation11 + $0xcc] ss:$16 sps:$4 sm:$0xff]   ;;  %v2584_v9 = vld [vmem:[#allocation11 + $0xe4] ss:$16 sps:$4 sm:$0xff]  }
  0x67   :  { %2464 = vmatmul.mubr.msk.bf16.vlgmr.msra.gmra.mrb[0].mxu0 %vm176_vm1, %v143_v15  ;;  %v2579_v8 = vld [vmem:[#allocation11 + $0xc8] ss:$16 sps:$4 sm:$0xff]   ;;  %v2587_v10 = vld [vmem:[#allocation11 + $0xec] ss:$16 sps:$4 sm:$0xff]   ;;  %v2582_v11 = vld [vmem:[#allocation11 + $0xe0] ss:$16 sps:$4 sm:$0xff]  }
  0x68   :  { %2468 = vmatpush3.bf16.msra.mxu0 %v2515_v14  ;;  %2469 = vmatprep.mubr.msk.bf16.mxu0 %vm2823_vm0, %v2822_v1  ;;  %v2585_v12 = vld [vmem:[#allocation11 + $0xe8] ss:$16 sps:$4 sm:$0xff]   ;;  %v2590_v13 = vld [vmem:[#allocation11 + $0x104] ss:$16 sps:$4 sm:$0xff]   ;;  %v2593_v14 = vld [vmem:[#allocation11 + $0x10c] ss:$16 sps:$4 sm:$0xff]  }
  0x69   :  { %381 = vmatpush1.bf16.msra.mxu1 %v2530_v19  ;;  %877 = vmatprep.subr.bf16.mxu0 %v2542_v32  ;;  %v2588_v15 = vld [vmem:[#allocation11 + $0x100] ss:$16 sps:$4 sm:$0xff]   ;;  %v2591_v16 = vld [vmem:[#allocation11 + $0x108] ss:$16 sps:$4 sm:$0xff]   ;;  %v2596_v17 = vld [vmem:[#allocation11 + $0x124] ss:$16 sps:$4 sm:$0xff]  }
  0x6a   :  { %382 = vmatprep.subr.bf16.mxu1 %v2531_v20  ;;  %v2599_v18 = vld [vmem:[#allocation11 + $0x12c] ss:$16 sps:$4 sm:$0xff]   ;;  %v2594_v19 = vld [vmem:[#allocation11 + $0x120] ss:$16 sps:$4 sm:$0xff]   ;;  %v2597_v20 = vld [vmem:[#allocation11 + $0x128] ss:$16 sps:$4 sm:$0xff]  }
  0x6b   :  { %v2612_v32 = vld [vmem:[#allocation11 + $0x180] ss:$16 sps:$4 sm:$0xff]  }
  0x6d   :  { %383 = vmatpush1.bf16.msra.mxu1 %v2533_v21  ;;  %v2602_v21 = vld [vmem:[#allocation11 + $0x144] ss:$16 sps:$4 sm:$0xff]  }
  0x6e   :  { %384 = vmatprep.subr.bf16.mxu1 %v2534_v27  ;;  %v2611_v27 = vld [vmem:[#allocation11 + $0x16c] ss:$16 sps:$4 sm:$0xff]  }
  0x71   :  { %385 = vmatpush1.bf16.msra.mxu1 %v2536_v28  ;;  %v2606_v28 = vld [vmem:[#allocation11 + $0x160] ss:$16 sps:$4 sm:$0xff]  }
  0x72   :  { %386 = vmatprep.subr.bf16.mxu1 %v2537_v29  ;;  %v2609_v29 = vld [vmem:[#allocation11 + $0x168] ss:$16 sps:$4 sm:$0xff]  }
  0x75   :  { %387 = vmatpush1.bf16.msra.mxu1 %v2539_v30  ;;  %v2614_v30 = vld [vmem:[#allocation11 + $0x184] ss:$16 sps:$4 sm:$0xff]  }
  0x76   :  { %918 = vmatprep.subr.bf16.mxu1 %v2545_v33  ;;  %v2615_v33 = vld [vmem:[#allocation11 + $0x188] ss:$16 sps:$4 sm:$0xff]  }
  0xd6   :  { %v135_v24 = vpop.permute.xlu0 %134 }
  0xd7   :  { %vm136_vm2 = vcmp.eq.s32.totalorder %v131_v23, %v135_v24  ;;  %v2605_v23 = vld [vmem:[#allocation11 + $0x14c] ss:$16 sps:$4 sm:$0xff]   ;;  %v2600_v24 = vld [vmem:[#allocation11 + $0x140] ss:$16 sps:$4 sm:$0xff]  }
  0xd8   :  { %v2270_v25 = vsel %vm136_vm2, 1.0, %v2822_v1  ;;  %v2572_v1 = vld [vmem:[#allocation11 + $0xa4] ss:$16 sps:$4 sm:$0xff]  }
  0xd9   :  { %v139_v26 = vpack.c.bf16 %v2270_v25, %v2270_v25  ;;  %v2603_v25 = vld [vmem:[#allocation11 + $0x148] ss:$16 sps:$4 sm:$0xff]  }
  0xdb   :  { %2470 = vmatmul.mubr.msk.bf16.vlgmr.msra.gmra.mrb[4].mxu0 %vm226_vm3, %v139_v26  ;;  %v2608_v26 = vld [vmem:[#allocation11 + $0x164] ss:$16 sps:$4 sm:$0xff]  }
  0xdc   :  { %878 = vmatpush1.bf16.msra.mxu0 %v2540_v31  ;;  %v2617_v31 = vld [vmem:[#allocation11 + $0x18c] ss:$16 sps:$4 sm:$0xff]  }
  0xdd   :  { %879 = vmatprep.subr.bf16.mxu0 %v2548_v34  ;;  %v2620_v34 = vld [vmem:[#allocation11 + $0x1a4] ss:$16 sps:$4 sm:$0xff]  }
  0xe0   :  { %880 = vmatpush1.bf16.msra.mxu0 %v2546_v36  ;;  %v2618_v36 = vld [vmem:[#allocation11 + $0x1a0] ss:$16 sps:$4 sm:$0xff]  }
  0xe1   :  { %881 = vmatprep.subr.bf16.mxu0 %v2554_v39  ;;  %v2629_v39 = vld [vmem:[#allocation11 + $0x1cc] ss:$16 sps:$4 sm:$0xff]  }
  0xe4   :  { %882 = vmatpush1.bf16.msra.mxu0 %v2552_v41  ;;  %v2627_v41 = vld [vmem:[#allocation11 + $0x1c8] ss:$16 sps:$4 sm:$0xff]  }
  0xe5   :  { %883 = vmatprep.subr.bf16.mxu0 %v2560_v42  ;;  %v2632_v42 = vld [vmem:[#allocation11 + $0x1e4] ss:$16 sps:$4 sm:$0xff]  }
  0xe8   :  { %884 = vmatpush1.bf16.msra.mxu0 %v2558_v43  ;;  %v2635_v43 = vld [vmem:[#allocation11 + $0x1ec] ss:$16 sps:$4 sm:$0xff]  }
  0xe9   :  { %885 = vmatprep.subr.bf16.mxu0 %v2566_v44  ;;  %v2630_v44 = vld [vmem:[#allocation11 + $0x1e0] ss:$16 sps:$4 sm:$0xff]  }
  0xec   :  { %886 = vmatpush1.bf16.msra.mxu0 %v2564_v45  ;;  %v2633_v45 = vld [vmem:[#allocation11 + $0x1e8] ss:$16 sps:$4 sm:$0xff]  }
  0xed   :  { %887 = vmatprep.subr.bf16.mxu0 %v2572_v1 }
  0xf0   :  { %888 = vmatpush1.bf16.msra.mxu0 %v2570_v3 }
  0xf1   :  { %889 = vmatprep.subr.bf16.mxu0 %v2578_v5 }
  0xf4   :  { %890 = vmatpush1.bf16.msra.mxu0 %v2576_v7 }
  0xf5   :  { %891 = vmatprep.subr.bf16.mxu0 %v2584_v9 }
  0xf8   :  { %892 = vmatpush1.bf16.msra.mxu0 %v2582_v11 }
  0xf9   :  { %893 = vmatprep.subr.bf16.mxu0 %v2590_v13 }
  0xfc   :  { %894 = vmatpush1.bf16.msra.mxu0 %v2588_v15 }
  0xfd   :  { %895 = vmatprep.subr.bf16.mxu0 %v2596_v17 }
 0x100   :  { %896 = vmatpush1.bf16.msra.mxu0 %v2594_v19 }
 0x101   :  { %897 = vmatprep.subr.bf16.mxu0 %v2602_v21 }
 0x104   :  { %898 = vmatpush1.bf16.msra.mxu0 %v2600_v24 }
 0x105   :  { %899 = vmatprep.subr.bf16.mxu0 %v2608_v26  ;;  %v414_v26 = vld [vmem:[#allocation8 + $0x1] ss:$8 sm:$0x3] }
 0x108   :  { %900 = vmatpush1.bf16.msra.mxu0 %v2606_v28 }
 0x109   :  { %901 = vmatprep.subr.bf16.mxu0 %v2614_v30 }
 0x10c   :  { %902 = vmatpush1.bf16.msra.mxu0 %v2612_v32 }
 0x10d   :  { %903 = vmatprep.subr.bf16.mxu0 %v2620_v34 }
 0x110   :  { %904 = vmatpush1.bf16.msra.mxu0 %v2618_v36 }
 0x13a   :  { %v214_v35 = vpop.f32.mrb[0].mxu0 }
 0x13b   :  { %v2465_v37 = vpop.f32.mrb[1].mxu0 }
 0x13c   :  { %v217_v38 = vpop.f32.mrb[2].mxu0  ;;  %v2621_v37 = vld [vmem:[#allocation11 + $0x1a8] ss:$16 sps:$4 sm:$0xff]  }
 0x13d   :  { %v2466_v40 = vpop.f32.mrb[3].mxu0  ;;  %v2626_v38 = vld [vmem:[#allocation11 + $0x1c4] ss:$16 sps:$4 sm:$0xff]  }
 0x13e   :  { %v2624_v40 = vld [vmem:[#allocation11 + $0x1c0] ss:$16 sps:$4 sm:$0xff]   ;;  %905 = vmatprep.subr.bf16.mxu0 %v2626_v38 }
 0x13f   :  { %906 = vmatpush1.bf16.msra.mxu0 %v2624_v40 }
 0x140   :  { %907 = vmatprep.subr.bf16.mxu0 %v2632_v42 }
 0x143   :  { %908 = vmatpush1.bf16.msra.mxu0 %v2630_v44 }
 0x1ae   :  { %v264_v46 = vpop.f32.mrb[4].mxu0 }
 0x1af   :  { %v265_v48 = vadd.f32 %v264_v46, %v214_v35  ;;  %v2471_v49 = vpop.f32.mrb[5].mxu0  ;;  %v2623_v35 = vld [vmem:[#allocation11 + $0x1ac] ss:$16 sps:$4 sm:$0xff]  }
 0x1b0   :  { %v267_v50 = vpop.f32.mrb[6].mxu0 }
 0x1b1   :  { %v271_v51 = vadd.f32 %v270_v47, %v265_v48  ;;  %v2472_v52 = vpop.f32.mrb[7].mxu0 }
 0x1b3   :  { %v273_v53 = vmul.f32 0.2, %v271_v51  ;;  %vm272_vm4 = vcmp.gt.f32.partialorder %v271_v51, 0.0 }
 0x1b5   :  { %v274_v54 = vsel %vm272_vm4, %v271_v51, %v273_v53 }
 0x1b6   :  { %v275_v56 = vpack.c.bf16 %v274_v54, %v274_v54 }
 0x1b8   :  { %405 = vmatmul.mubr.bf16.vlgmr.msra.gmra.mrb[0].mxu1 %v275_v56 }
 0x1b9   :  { %919 = vmatpush1.bf16.msra.mxu1 %v2543_v55 }
 0x1ba   :  { %920 = vmatprep.subr.bf16.mxu1 %v2551_v57 }
 0x1bd   :  { %921 = vmatpush1.bf16.msra.mxu1 %v2549_v58 }
 0x1be   :  { %922 = vmatprep.subr.bf16.mxu1 %v2557_v59 }
 0x1c1   :  { %923 = vmatpush1.bf16.msra.mxu1 %v2555_v60 }
 0x1c2   :  { %924 = vmatprep.subr.bf16.mxu1 %v2563_v61 }
 0x1c5   :  { %925 = vmatpush1.bf16.msra.mxu1 %v2561_v62 }
 0x1c6   :  { %926 = vmatprep.subr.bf16.mxu1 %v2569_v63 }
 0x1c9   :  { %927 = vmatpush1.bf16.msra.mxu1 %v2567_v0 }
 0x1ca   :  { %928 = vmatprep.subr.bf16.mxu1 %v2575_v2 }
 0x1cd   :  { %929 = vmatpush1.bf16.msra.mxu1 %v2573_v4 }
 0x1ce   :  { %930 = vmatprep.subr.bf16.mxu1 %v2581_v6 }
 0x1d1   :  { %931 = vmatpush1.bf16.msra.mxu1 %v2579_v8 }
 0x1d2   :  { %932 = vmatprep.subr.bf16.mxu1 %v2587_v10 }
 0x1d5   :  { %933 = vmatpush1.bf16.msra.mxu1 %v2585_v12 }
 0x1d6   :  { %934 = vmatprep.subr.bf16.mxu1 %v2593_v14 }
 0x1d9   :  { %935 = vmatpush1.bf16.msra.mxu1 %v2591_v16 }
 0x1da   :  { %936 = vmatprep.subr.bf16.mxu1 %v2599_v18 }
 0x1dd   :  { %937 = vmatpush1.bf16.msra.mxu1 %v2597_v20 }
 0x1de   :  { %938 = vmatprep.subr.bf16.mxu1 %v2605_v23  ;;  %v2980_v23 = vshrl.u32 %v130_v22, 7 }
 0x1e0   :  { %v2983_v24 = vsub.s32 0, %v2980_v23 }
 0x1e1   :  { %939 = vmatpush1.bf16.msra.mxu1 %v2603_v25  ;;  %v2986_v25 = vsub.s32 1, %v2980_v23 }
 0x1e2   :  { %940 = vmatprep.subr.bf16.mxu1 %v2611_v27  ;;  %v416_v27 = vld [vmem:[#allocation8 + $0x2] ss:$8 sm:$0x3] }
 0x1e3   :  { %v467_v32 = vrot.slane %v414_v26, %v2986_v25  ;;  %v476_v22 = vrot.slane %v416_v27, %v2983_v24  ;;  %v480_v36 = vrot.slane %v416_v27, %v2986_v25 }
 0x1e5   :  { %941 = vmatpush1.bf16.msra.mxu1 %v2609_v29  ;;  %v463_v29 = vrot.slane %v414_v26, %v2983_v24 }
 0x1e6   :  { %942 = vmatprep.subr.bf16.mxu1 %v2617_v31 }
 0x1e9   :  { %943 = vmatpush1.bf16.msra.mxu1 %v2615_v33 }
 0x1ea   :  { %944 = vmatprep.subr.bf16.mxu1 %v2623_v35 }
 0x1ed   :  { %945 = vmatpush1.bf16.msra.mxu1 %v2621_v37 }
 0x1ee   :  { %946 = vmatprep.subr.bf16.mxu1 %v2629_v39 }
 0x1f1   :  { %947 = vmatpush1.bf16.msra.mxu1 %v2627_v41 }
 0x1f2   :  { %948 = vmatprep.subr.bf16.mxu1 %v2635_v43 }
 0x1f5   :  { %949 = vmatpush1.bf16.msra.mxu1 %v2633_v45 }
 0x28b   :  { %v406_v46 = vpop.f32.mrb[0].mxu1 }
 0x28c   :  { %v417_v47 = vrot.slane %v406_v46, 4  ;;  %v429_v48 = vmul.f32 %v406_v46, %v406_v46  ;;  %v408_v49 = vpop.f32.mrb[1].mxu1 }
 0x28d   :  { %v423_v50 = vrot.slane %v408_v49, 4  ;;  %v430_v51 = vmul.f32 %v408_v49, %v408_v49  ;;  %v410_v52 = vpop.f32.mrb[2].mxu1 }
 0x28e   :  { %v418_v53 = vadd.f32 %v417_v47, %v406_v46  ;;  %v431_v54 = vrot.slane %v429_v48, 4  ;;  %v411_v55 = vpop.f32.mrb[3].mxu1 }
 0x28f   :  { %v424_v56 = vadd.f32 %v423_v50, %v408_v49  ;;  %v437_v57 = vrot.slane %v430_v51, 4 }
 0x290   :  { %v419_v58 = vrot.slane %v418_v53, 2  ;;  %v432_v59 = vadd.f32 %v431_v54, %v429_v48 }
 0x291   :  { %v425_v60 = vrot.slane %v424_v56, 2  ;;  %v438_v61 = vadd.f32 %v437_v57, %v430_v51 }
 0x292   :  { %v420_v62 = vadd.f32 %v419_v58, %v418_v53  ;;  %v433_v63 = vrot.slane %v432_v59, 2 }
 0x293   :  { %v426_v0 = vadd.f32 %v425_v60, %v424_v56  ;;  %v439_v1 = vrot.slane %v438_v61, 2 }
 0x294   :  { %v421_v2 = vrot.slane %v420_v62, 1  ;;  %v434_v3 = vadd.f32 %v433_v63, %v432_v59 }
 0x295   :  { %v427_v4 = vrot.slane %v426_v0, 1  ;;  %v440_v5 = vadd.f32 %v439_v1, %v438_v61 }
 0x296   :  { %v422_v6 = vadd.f32 %v421_v2, %v420_v62  ;;  %v435_v7 = vrot.slane %v434_v3, 1 }
 0x297   :  { %v428_v8 = vadd.f32 %v427_v4, %v426_v0  ;;  %v441_v9 = vrot.slane %v440_v5, 1 }
 0x298   :  { %v436_v10 = vadd.f32 %v435_v7, %v434_v3  ;;  %v443_v11 = vmul.f32 0.125, %v422_v6 }
 0x299   :  { %v442_v12 = vadd.f32 %v441_v9, %v440_v5  ;;  %v444_v13 = vmul.f32 0.125, %v428_v8 }
 0x29a   :  { %v445_v14 = vmul.f32 0.125, %v436_v10  ;;  %v447_v15 = vmul.f32 %v443_v11, %v443_v11  ;;  %v451_v28 = vsub.f32 %v406_v46, %v443_v11 }
 0x29b   :  { %v446_v16 = vmul.f32 0.125, %v442_v12  ;;  %v448_v17 = vmul.f32 %v444_v13, %v444_v13  ;;  %v452_v31 = vsub.f32 %v408_v49, %v444_v13 }
 0x29c   :  { %v449_v18 = vsub.f32 %v445_v14, %v447_v15 }
 0x29d   :  { %v450_v19 = vsub.f32 %v446_v16, %v448_v17 }
 0x29e   :  { %v453_v20 = vadd.f32 0.8, %v449_v18 }
 0x29f   :  { %v454_v21 = vadd.f32 0.8, %v450_v19 }
 0x2a0   :  { %2636 = vrsqrt.f32 %v453_v20 }
 0x2a1   :  { %2638 = vrsqrt.f32 %v454_v21 }
 0x2aa   :  { %v2637_v30 = vpop.eup %2636 }
 0x2ab   :  { %v2639_v33 = vpop.eup %2638  ;;  %v457_v34 = vmul.f32 %v2637_v30, %v451_v28 }
 0x2ac   :  { %v458_v35 = vmul.f32 %v2639_v33, %v452_v31 }
 0x2ad   :  { %v470_v37 = vmul.f32 %v463_v29, %v457_v34 }
 0x2ae   :  { %v471_v38 = vmul.f32 %v467_v32, %v458_v35 }
 0x2af   :  { %v483_v39 = vadd.f32 %v476_v22, %v470_v37 }
 0x2b0   :  { %v484_v40 = vadd.f32 %v480_v36, %v471_v38 }
 0x2b1   :  { %vm485_vm5 = vcmp.gt.f32.partialorder %v483_v39, 0.0  ;;  %v487_v41 = vmul.f32 0.2, %v483_v39 }
 0x2b2   :  { %vm486_vm6 = vcmp.gt.f32.partialorder %v484_v40, 0.0  ;;  %v488_v42 = vmul.f32 0.2, %v484_v40 }
 0x2b3   :  { %v489_v43 = vsel %vm485_vm5, %v483_v39, %v487_v41 }
 0x2b4   :  { %v490_v44 = vsel %vm486_vm6, %v484_v40, %v488_v42  ;;  %v491_v46 = vpack.c.bf16 %v489_v43, %v489_v43 }
 0x2b5   :  { %v492_v45 = vpack.c.bf16 %v490_v44, %v490_v44 }
 0x2b7   :  { %909 = vmatprep.mubr.bf16.mxu0 %v492_v45  ;;  %950 = vmatprep.mubr.bf16.mxu1 %v492_v45 }
 0x2b8   :  { %910 = vmatmul.mubr.bf16.vlgmr.msra.gmra.mrb[8].mxu0 %v491_v46  ;;  %951 = vmatmul.mubr.bf16.vlgmr.msra.gmra.mrb[4].mxu1 %v491_v46 }
 0x2b9   :  { %2763 = shalt.err (!%p2760_p6)  }
 0x2ba   :  { %s2764_s23 = scalar_lea.vmem %s127_s3, 8192  ;;  %p2769_p8 = scmp.lt.s32.totalorder %s127_s3, %s127_s3 }
 0x2bb   :  { %p2765_p7 = scmp.ne.s32.totalorder %s127_s3, %s2764_s23  ;;  %p2770_p9 = scmp.lt.s32.totalorder %s2764_s23, %s2764_s23 }
 0x2bd   :  { %p2771_p10 = por %p2770_p9, %p2769_p8 }
 0x2bf   :  { %p2772_p11 = pnand %p2771_p10, %p2765_p7 }
 0x2c1   :  { %2775 = shalt.err (!%p2772_p11)  }
 0x2c2   :  { %129 = dma.hbm_to_vmem [thread:$0]  %s3222_s8, 8192, %s127_s3, [#allocation4 + $0x1] }
 0x38b   :  { %v3004_v47 = vpop.f32.mrb[8].mxu0  ;;  %v3006_v48 = vpop.f32.mrb[4].mxu1 }
 0x38c   :  { %v963_v49 = vrot.slane %v3004_v47, 4  ;;  %v987_v50 = vmul.f32 %v3004_v47, %v3004_v47  ;;  %v975_v51 = vrot.slane %v3006_v48, 4  ;;  %v989_v52 = vmul.f32 %v3006_v48, %v3006_v48  ;;  %v3014_v53 = vpop.f32.mrb[9].mxu0  ;;  %v3016_v54 = vpop.f32.mrb[5].mxu1 }
 0x38d   :  { %v969_v55 = vrot.slane %v3014_v53, 4  ;;  %v988_v56 = vmul.f32 %v3014_v53, %v3014_v53  ;;  %v981_v57 = vrot.slane %v3016_v54, 4  ;;  %v990_v58 = vmul.f32 %v3016_v54, %v3016_v54  ;;  %v915_v59 = vpop.f32.mrb[10].mxu0  ;;  %v956_v60 = vpop.f32.mrb[6].mxu1 }
 0x38e   :  { %v964_v61 = vadd.f32 %v963_v49, %v3004_v47  ;;  %v991_v62 = vrot.slane %v987_v50, 4  ;;  %v976_v63 = vadd.f32 %v975_v51, %v3006_v48  ;;  %v1003_v0 = vrot.slane %v989_v52, 4  ;;  %v916_v1 = vpop.f32.mrb[11].mxu0  ;;  %v957_v2 = vpop.f32.mrb[7].mxu1 }
 0x38f   :  { %v970_v3 = vadd.f32 %v969_v55, %v3014_v53  ;;  %v997_v4 = vrot.slane %v988_v56, 4  ;;  %v982_v5 = vadd.f32 %v981_v57, %v3016_v54  ;;  %v1009_v6 = vrot.slane %v990_v58, 4 }
 0x390   :  { %v965_v7 = vrot.slane %v964_v61, 2  ;;  %v992_v8 = vadd.f32 %v991_v62, %v987_v50  ;;  %v977_v9 = vrot.slane %v976_v63, 2  ;;  %v1004_v10 = vadd.f32 %v1003_v0, %v989_v52 }
 0x391   :  { %v971_v11 = vrot.slane %v970_v3, 2  ;;  %v998_v12 = vadd.f32 %v997_v4, %v988_v56  ;;  %v983_v13 = vrot.slane %v982_v5, 2  ;;  %v1010_v14 = vadd.f32 %v1009_v6, %v990_v58  ;;  %v960_v6 = vld [vmem:[#allocation8 + $0x3] ss:$8 sm:$0xf] }
 0x392   :  { %v966_v15 = vadd.f32 %v965_v7, %v964_v61  ;;  %v993_v16 = vrot.slane %v992_v8, 2  ;;  %v978_v17 = vadd.f32 %v977_v9, %v976_v63  ;;  %v1005_v18 = vrot.slane %v1004_v10, 2 }
 0x393   :  { %v972_v19 = vadd.f32 %v971_v11, %v970_v3  ;;  %v999_v20 = vrot.slane %v998_v12, 2  ;;  %v984_v21 = vadd.f32 %v983_v13, %v982_v5  ;;  %v1011_v26 = vrot.slane %v1010_v14, 2 }
 0x394   :  { %v967_v27 = vrot.slane %v966_v15, 1  ;;  %v994_v28 = vadd.f32 %v993_v16, %v992_v8  ;;  %v979_v29 = vrot.slane %v978_v17, 1  ;;  %v1006_v30 = vadd.f32 %v1005_v18, %v1004_v10  ;;  %v962_v8 = vld [vmem:[#allocation8 + $0x4] ss:$8 sm:$0xf] }
 0x395   :  { %v973_v31 = vrot.slane %v972_v19, 1  ;;  %v1000_v32 = vadd.f32 %v999_v20, %v998_v12  ;;  %v985_v33 = vrot.slane %v984_v21, 1  ;;  %v1012_v34 = vadd.f32 %v1011_v26, %v1010_v14 }
 0x396   :  { %v968_v22 = vadd.f32 %v967_v27, %v966_v15  ;;  %v995_v35 = vrot.slane %v994_v28, 1  ;;  %v980_v36 = vadd.f32 %v979_v29, %v978_v17  ;;  %v1007_v37 = vrot.slane %v1006_v30, 1 }
 0x397   :  { %v974_v38 = vadd.f32 %v973_v31, %v972_v19  ;;  %v1001_v39 = vrot.slane %v1000_v32, 1  ;;  %v986_v40 = vadd.f32 %v985_v33, %v984_v21  ;;  %v1013_v41 = vrot.slane %v1012_v34, 1 }
 0x398   :  { %v996_v42 = vadd.f32 %v995_v35, %v994_v28  ;;  %v1015_v43 = vmul.f32 0.125, %v968_v22  ;;  %v1008_v44 = vadd.f32 %v1007_v37, %v1006_v30  ;;  %v1017_v45 = vmul.f32 0.125, %v980_v36 }
 0x399   :  { %v1002_v46 = vadd.f32 %v1001_v39, %v1000_v32  ;;  %v1016_v49 = vmul.f32 0.125, %v974_v38  ;;  %v1014_v50 = vadd.f32 %v1013_v41, %v1012_v34  ;;  %v1018_v51 = vmul.f32 0.125, %v986_v40 }
 0x39a   :  { %v1019_v52 = vmul.f32 0.125, %v996_v42  ;;  %v1023_v55 = vmul.f32 %v1015_v43, %v1015_v43  ;;  %v1021_v56 = vmul.f32 0.125, %v1008_v44  ;;  %v1025_v57 = vmul.f32 %v1017_v45, %v1017_v45 }
 0x39b   :  { %v1020_v58 = vmul.f32 0.125, %v1002_v46  ;;  %v1024_v59 = vmul.f32 %v1016_v49, %v1016_v49  ;;  %v1022_v61 = vmul.f32 0.125, %v1014_v50  ;;  %v1026_v62 = vmul.f32 %v1018_v51, %v1018_v51 }
 0x39c   :  { %v1027_v60 = vsub.f32 %v1019_v52, %v1023_v55  ;;  %v1029_v63 = vsub.f32 %v1021_v56, %v1025_v57  ;;  %v3029_v7 = vsub.s32 2, %v2980_v23  ;;  %v3032_v9 = vsub.s32 3, %v2980_v23 }
 0x39d   :  { %v1028_v0 = vsub.f32 %v1020_v58, %v1024_v59  ;;  %v1030_v2 = vsub.f32 %v1022_v61, %v1026_v62  ;;  %v1031_v10 = vsub.f32 %v3004_v47, %v1015_v43  ;;  %v1051_v11 = vrot.slane %v960_v6, %v2983_v24 }
 0x39e   :  { %v1035_v1 = vadd.f32 0.8, %v1027_v60  ;;  %v1037_v3 = vadd.f32 0.8, %v1029_v63  ;;  %v1033_v13 = vsub.f32 %v3006_v48, %v1017_v45  ;;  %v1059_v14 = vrot.slane %v960_v6, %v3029_v7 }
 0x39f   :  { %v1036_v4 = vadd.f32 0.8, %v1028_v0  ;;  %v1038_v5 = vadd.f32 0.8, %v1030_v2  ;;  %v1076_v17 = vrot.slane %v962_v8, %v2983_v24  ;;  %v1032_v18 = vsub.f32 %v3014_v53, %v1016_v49 }
 0x3a0   :  { %2640 = vrsqrt.f32 %v1035_v1  ;;  %v1055_v19 = vrot.slane %v960_v6, %v2986_v25  ;;  %v1084_v26 = vrot.slane %v962_v8, %v3029_v7  ;;  %v1034_v47 = vsub.f32 %v3016_v54, %v1018_v51 }
 0x3a1   :  { %2642 = vrsqrt.f32 %v1037_v3  ;;  %v1063_v27 = vrot.slane %v960_v6, %v3032_v9  ;;  %v1080_v30 = vrot.slane %v962_v8, %v2986_v25  ;;  %v1088_v33 = vrot.slane %v962_v8, %v3032_v9 }
 0x3a2   :  { %2644 = vrsqrt.f32 %v1036_v4 }
 0x3a3   :  { %2646 = vrsqrt.f32 %v1038_v5 }
 0x3aa   :  { %v2641_v12 = vpop.eup %2640 }
 0x3ab   :  { %v2643_v15 = vpop.eup %2642  ;;  %v1043_v16 = vmul.f32 %v2641_v12, %v1031_v10 }
 0x3ac   :  { %v2645_v20 = vpop.eup %2644  ;;  %v1045_v21 = vmul.f32 %v2643_v15, %v1033_v13 }
 0x3ad   :  { %v2647_v28 = vpop.eup %2646  ;;  %v1068_v48 = vmul.f32 %v1051_v11, %v1043_v16  ;;  %v1044_v29 = vmul.f32 %v2645_v20, %v1032_v18 }
 0x3ae   :  { %v1070_v31 = vmul.f32 %v1059_v14, %v1045_v21  ;;  %v1046_v32 = vmul.f32 %v2647_v28, %v1034_v47 }
 0x3af   :  { %v1093_v53 = vadd.f32 %v1076_v17, %v1068_v48  ;;  %v1069_v34 = vmul.f32 %v1055_v19, %v1044_v29 }
 0x3b0   :  { %v1095_v22 = vadd.f32 %v1084_v26, %v1070_v31  ;;  %v1071_v35 = vmul.f32 %v1063_v27, %v1046_v32 }
 0x3b1   :  { %vm1097_vm7 = vcmp.gt.f32.partialorder %v1093_v53, 0.0  ;;  %v1101_v36 = vmul.f32 0.2, %v1093_v53  ;;  %v1094_v37 = vadd.f32 %v1080_v30, %v1069_v34 }
 0x3b2   :  { %vm1099_vm8 = vcmp.gt.f32.partialorder %v1095_v22, 0.0  ;;  %v1103_v54 = vmul.f32 0.2, %v1095_v22  ;;  %v1096_v38 = vadd.f32 %v1088_v33, %v1071_v35 }
 0x3b3   :  { %v3046_v39 = vsel %vm1097_vm7, %v1093_v53, %v1101_v36  ;;  %vm1098_vm9 = vcmp.gt.f32.partialorder %v1094_v37, 0.0  ;;  %v1102_v40 = vmul.f32 0.2, %v1094_v37 }
 0x3b4   :  { %v3048_v41 = vsel %vm1099_vm8, %v1095_v22, %v1103_v54  ;;  %vm1100_vm10 = vcmp.gt.f32.partialorder %v1096_v38, 0.0  ;;  %v1104_v42 = vmul.f32 0.2, %v1096_v38 }
 0x3b5   :  { %v1106_v43 = vsel %vm1098_vm9, %v1094_v37, %v1102_v40 }
 0x3b6   :  { %v3050_v44 = vsel %vm1100_vm10, %v1096_v38, %v1104_v42 }
 0x3b7   :  { %2804 = dma.done.wait [#allocation4], 32768 }
 0x3b8   :  { %2805 = vsyncadd [#allocation4], 4294934528  ;;  %v3052_v45 = vpack.c.bf16 %v1106_v43, %v1106_v43  ;;  %v1118_v46 = vld [vmem:[#allocation2 + $0x8] sm:$0xff]  ;;  %v1120_v49 = vld [vmem:[#allocation2 + $0x18] sm:$0xff] }
 0x3b9   :  { %v1117_v50 = vld [vmem:[#allocation2] sm:$0xff]  ;;  %1373 = vmatprep.subr.bf16.mxu0 %v1118_v46  ;;  %1455 = vmatprep.subr.bf16.mxu1 %v1120_v49  ;;  %v1119_v51 = vld [vmem:[#allocation2 + $0x10] sm:$0xff]  ;;  %v1126_v52 = vld [vmem:[#allocation2 + $0x48] sm:$0xff] }
 0x3ba   :  { %1405 = vmatprep.mubr.bf16.mxu0 %v3052_v45  ;;  %1487 = vmatprep.mubr.bf16.mxu1 %v3052_v45  ;;  %v1128_v55 = vld [vmem:[#allocation2 + $0x58] sm:$0xff]  ;;  %v1125_v56 = vld [vmem:[#allocation2 + $0x40] sm:$0xff]  ;;  %v1127_v57 = vld [vmem:[#allocation2 + $0x50] sm:$0xff] }
 0x3bb   :  { %1374 = vmatpush1.bf16.msra.mxu0 %v1117_v50  ;;  %1456 = vmatpush1.bf16.msra.mxu1 %v1119_v51  ;;  %v1134_v58 = vld [vmem:[#allocation2 + $0x88] sm:$0xff]  ;;  %v1136_v59 = vld [vmem:[#allocation2 + $0x98] sm:$0xff]  ;;  %v1133_v60 = vld [vmem:[#allocation2 + $0x80] sm:$0xff] }
 0x3bc   :  { %1375 = vmatprep.subr.bf16.mxu0 %v1126_v52  ;;  %1457 = vmatprep.subr.bf16.mxu1 %v1128_v55  ;;  %v1135_v61 = vld [vmem:[#allocation2 + $0x90] sm:$0xff]  ;;  %v1142_v62 = vld [vmem:[#allocation2 + $0xc8] sm:$0xff]  ;;  %v1144_v63 = vld [vmem:[#allocation2 + $0xd8] sm:$0xff] }
 0x3bd   :  { %v1141_v0 = vld [vmem:[#allocation2 + $0xc0] sm:$0xff]  ;;  %v1143_v1 = vld [vmem:[#allocation2 + $0xd0] sm:$0xff]  ;;  %v1150_v2 = vld [vmem:[#allocation2 + $0x108] sm:$0xff] }
 0x3be   :  { %v1152_v3 = vld [vmem:[#allocation2 + $0x118] sm:$0xff]  ;;  %v1149_v4 = vld [vmem:[#allocation2 + $0x100] sm:$0xff]  ;;  %v1151_v5 = vld [vmem:[#allocation2 + $0x110] sm:$0xff] }
 0x3bf   :  { %1376 = vmatpush1.bf16.msra.mxu0 %v1125_v56  ;;  %1458 = vmatpush1.bf16.msra.mxu1 %v1127_v57  ;;  %v1158_v6 = vld [vmem:[#allocation2 + $0x148] sm:$0xff]  ;;  %v1160_v8 = vld [vmem:[#allocation2 + $0x158] sm:$0xff]  ;;  %v1157_v10 = vld [vmem:[#allocation2 + $0x140] sm:$0xff] }
 0x3c0   :  { %1377 = vmatprep.subr.bf16.mxu0 %v1134_v58  ;;  %1459 = vmatprep.subr.bf16.mxu1 %v1136_v59  ;;  %v1159_v11 = vld [vmem:[#allocation2 + $0x150] sm:$0xff]  ;;  %v1166_v12 = vld [vmem:[#allocation2 + $0x188] sm:$0xff]  ;;  %v1168_v13 = vld [vmem:[#allocation2 + $0x198] sm:$0xff] }
 0x3c1   :  { %v1165_v14 = vld [vmem:[#allocation2 + $0x180] sm:$0xff]  ;;  %v1167_v15 = vld [vmem:[#allocation2 + $0x190] sm:$0xff]  ;;  %v1174_v16 = vld [vmem:[#allocation2 + $0x1c8] sm:$0xff] }
 0x3c2   :  { %v1176_v17 = vld [vmem:[#allocation2 + $0x1d8] sm:$0xff]  ;;  %v1173_v18 = vld [vmem:[#allocation2 + $0x1c0] sm:$0xff]  ;;  %v1175_v19 = vld [vmem:[#allocation2 + $0x1d0] sm:$0xff] }
 0x3c3   :  { %1378 = vmatpush1.bf16.msra.mxu0 %v1133_v60  ;;  %1460 = vmatpush1.bf16.msra.mxu1 %v1135_v61  ;;  %v1182_v20 = vld [vmem:[#allocation2 + $0x208] sm:$0xff]  ;;  %v1184_v21 = vld [vmem:[#allocation2 + $0x218] sm:$0xff]  ;;  %v1181_v26 = vld [vmem:[#allocation2 + $0x200] sm:$0xff]  ;;  %v3058_v61 = vpack.c.bf16 %v3046_v39, %v3046_v39 }
 0x3c4   :  { %1379 = vmatprep.subr.bf16.mxu0 %v1142_v62  ;;  %1461 = vmatprep.subr.bf16.mxu1 %v1144_v63  ;;  %v1183_v47 = vld [vmem:[#allocation2 + $0x210] sm:$0xff]  ;;  %v1190_v27 = vld [vmem:[#allocation2 + $0x248] sm:$0xff]  ;;  %v1192_v28 = vld [vmem:[#allocation2 + $0x258] sm:$0xff] }
 0x3c5   :  { %v1189_v48 = vld [vmem:[#allocation2 + $0x240] sm:$0xff]  ;;  %v1191_v29 = vld [vmem:[#allocation2 + $0x250] sm:$0xff]  ;;  %v1198_v30 = vld [vmem:[#allocation2 + $0x288] sm:$0xff] }
 0x3c6   :  { %v1200_v31 = vld [vmem:[#allocation2 + $0x298] sm:$0xff]  ;;  %v1197_v32 = vld [vmem:[#allocation2 + $0x280] sm:$0xff]  ;;  %v1199_v33 = vld [vmem:[#allocation2 + $0x290] sm:$0xff] }
 0x3c7   :  { %1380 = vmatpush1.bf16.msra.mxu0 %v1141_v0  ;;  %1462 = vmatpush1.bf16.msra.mxu1 %v1143_v1  ;;  %v1206_v53 = vld [vmem:[#allocation2 + $0x2c8] sm:$0xff]  ;;  %v1208_v34 = vld [vmem:[#allocation2 + $0x2d8] sm:$0xff]  ;;  %v1205_v22 = vld [vmem:[#allocation2 + $0x2c0] sm:$0xff] }
 0x3c8   :  { %1381 = vmatprep.subr.bf16.mxu0 %v1150_v2  ;;  %1463 = vmatprep.subr.bf16.mxu1 %v1152_v3  ;;  %v1207_v35 = vld [vmem:[#allocation2 + $0x2d0] sm:$0xff]  ;;  %v1214_v36 = vld [vmem:[#allocation2 + $0x308] sm:$0xff]  ;;  %v1216_v37 = vld [vmem:[#allocation2 + $0x318] sm:$0xff]  ;;  %v3062_v2 = vpack.c.bf16 %v3050_v44, %v3050_v44 }
 0x3c9   :  { %v1213_v54 = vld [vmem:[#allocation2 + $0x300] sm:$0xff]  ;;  %v1215_v38 = vld [vmem:[#allocation2 + $0x310] sm:$0xff]  ;;  %v1222_v40 = vld [vmem:[#allocation2 + $0x348] sm:$0xff] }
 0x3ca   :  { %v1224_v42 = vld [vmem:[#allocation2 + $0x358] sm:$0xff]  ;;  %v1221_v43 = vld [vmem:[#allocation2 + $0x340] sm:$0xff]  ;;  %v1223_v46 = vld [vmem:[#allocation2 + $0x350] sm:$0xff] }
 0x3cb   :  { %1382 = vmatpush1.bf16.msra.mxu0 %v1149_v4  ;;  %1464 = vmatpush1.bf16.msra.mxu1 %v1151_v5  ;;  %v1230_v49 = vld [vmem:[#allocation2 + $0x388] sm:$0xff]  ;;  %v1232_v50 = vld [vmem:[#allocation2 + $0x398] sm:$0xff]  ;;  %v1229_v51 = vld [vmem:[#allocation2 + $0x380] sm:$0xff] }
 0x3cc   :  { %1383 = vmatprep.subr.bf16.mxu0 %v1158_v6  ;;  %1465 = vmatprep.subr.bf16.mxu1 %v1160_v8  ;;  %v1231_v52 = vld [vmem:[#allocation2 + $0x390] sm:$0xff]  ;;  %v1238_v55 = vld [vmem:[#allocation2 + $0x3c8] sm:$0xff]  ;;  %v1240_v56 = vld [vmem:[#allocation2 + $0x3d8] sm:$0xff] }
 0x3cd   :  { %v1237_v57 = vld [vmem:[#allocation2 + $0x3c0] sm:$0xff]  ;;  %v1239_v58 = vld [vmem:[#allocation2 + $0x3d0] sm:$0xff]  ;;  %v1246_v59 = vld [vmem:[#allocation2 + $0x408] sm:$0xff] }
 0x3ce   :  { %v1248_v60 = vld [vmem:[#allocation2 + $0x418] sm:$0xff]  ;;  %v1245_v62 = vld [vmem:[#allocation2 + $0x400] sm:$0xff]  ;;  %v1247_v63 = vld [vmem:[#allocation2 + $0x410] sm:$0xff] }
 0x3cf   :  { %1384 = vmatpush1.bf16.msra.mxu0 %v1157_v10  ;;  %1466 = vmatpush1.bf16.msra.mxu1 %v1159_v11  ;;  %v1254_v0 = vld [vmem:[#allocation2 + $0x448] sm:$0xff]  ;;  %v1256_v1 = vld [vmem:[#allocation2 + $0x458] sm:$0xff]  ;;  %v1253_v39 = vld [vmem:[#allocation2 + $0x440] sm:$0xff] }
 0x3d0   :  { %1385 = vmatprep.subr.bf16.mxu0 %v1166_v12  ;;  %1467 = vmatprep.subr.bf16.mxu1 %v1168_v13  ;;  %v1255_v3 = vld [vmem:[#allocation2 + $0x450] sm:$0xff]  ;;  %v1262_v4 = vld [vmem:[#allocation2 + $0x488] sm:$0xff]  ;;  %v1264_v5 = vld [vmem:[#allocation2 + $0x498] sm:$0xff] }
 0x3d1   :  { %v1261_v44 = vld [vmem:[#allocation2 + $0x480] sm:$0xff]  ;;  %v1263_v6 = vld [vmem:[#allocation2 + $0x490] sm:$0xff]  ;;  %v1270_v8 = vld [vmem:[#allocation2 + $0x4c8] sm:$0xff] }
 0x3d2   :  { %v1272_v10 = vld [vmem:[#allocation2 + $0x4d8] sm:$0xff]  ;;  %v1269_v11 = vld [vmem:[#allocation2 + $0x4c0] sm:$0xff]  ;;  %v1271_v12 = vld [vmem:[#allocation2 + $0x4d0] sm:$0xff] }
 0x3d3   :  { %1386 = vmatpush1.bf16.msra.mxu0 %v1165_v14  ;;  %1468 = vmatpush1.bf16.msra.mxu1 %v1167_v15  ;;  %v1278_v13 = vld [vmem:[#allocation2 + $0x508] sm:$0xff]  ;;  %v1280_v14 = vld [vmem:[#allocation2 + $0x518] sm:$0xff]  ;;  %v1277_v15 = vld [vmem:[#allocation2 + $0x500] sm:$0xff] }
 0x3d4   :  { %1387 = vmatprep.subr.bf16.mxu0 %v1174_v16  ;;  %1469 = vmatprep.subr.bf16.mxu1 %v1176_v17  ;;  %v1279_v16 = vld [vmem:[#allocation2 + $0x510] sm:$0xff]  ;;  %v1286_v17 = vld [vmem:[#allocation2 + $0x548] sm:$0xff] }
 0x3d7   :  { %1388 = vmatpush1.bf16.msra.mxu0 %v1173_v18  ;;  %1470 = vmatpush1.bf16.msra.mxu1 %v1175_v19  ;;  %v1288_v18 = vld [vmem:[#allocation2 + $0x558] sm:$0xff]  ;;  %v1285_v19 = vld [vmem:[#allocation2 + $0x540] sm:$0xff] }
 0x3d8   :  { %1389 = vmatprep.subr.bf16.mxu0 %v1182_v20  ;;  %1471 = vmatprep.subr.bf16.mxu1 %v1184_v21  ;;  %v1287_v20 = vld [vmem:[#allocation2 + $0x550] sm:$0xff]  ;;  %v1294_v21 = vld [vmem:[#allocation2 + $0x588] sm:$0xff] }
 0x3db   :  { %1390 = vmatpush1.bf16.msra.mxu0 %v1181_v26  ;;  %1472 = vmatpush1.bf16.msra.mxu1 %v1183_v47  ;;  %v1296_v26 = vld [vmem:[#allocation2 + $0x598] sm:$0xff]  ;;  %v1293_v47 = vld [vmem:[#allocation2 + $0x580] sm:$0xff] }
 0x3dc   :  { %1391 = vmatprep.subr.bf16.mxu0 %v1190_v27  ;;  %1473 = vmatprep.subr.bf16.mxu1 %v1192_v28  ;;  %v1295_v27 = vld [vmem:[#allocation2 + $0x590] sm:$0xff]  ;;  %v1302_v28 = vld [vmem:[#allocation2 + $0x5c8] sm:$0xff] }
 0x3df   :  { %1392 = vmatpush1.bf16.msra.mxu0 %v1189_v48  ;;  %1474 = vmatpush1.bf16.msra.mxu1 %v1191_v29  ;;  %v1304_v48 = vld [vmem:[#allocation2 + $0x5d8] sm:$0xff]  ;;  %v1301_v29 = vld [vmem:[#allocation2 + $0x5c0] sm:$0xff] }
 0x3e0   :  { %1393 = vmatprep.subr.bf16.mxu0 %v1198_v30  ;;  %1475 = vmatprep.subr.bf16.mxu1 %v1200_v31  ;;  %v1303_v30 = vld [vmem:[#allocation2 + $0x5d0] sm:$0xff]  ;;  %v1310_v31 = vld [vmem:[#allocation2 + $0x608] sm:$0xff] }
 0x3e3   :  { %1394 = vmatpush1.bf16.msra.mxu0 %v1197_v32  ;;  %1476 = vmatpush1.bf16.msra.mxu1 %v1199_v33  ;;  %v1312_v32 = vld [vmem:[#allocation2 + $0x618] sm:$0xff]  ;;  %v1309_v33 = vld [vmem:[#allocation2 + $0x600] sm:$0xff] }
 0x3e4   :  { %1395 = vmatprep.subr.bf16.mxu0 %v1206_v53  ;;  %1477 = vmatprep.subr.bf16.mxu1 %v1208_v34  ;;  %v1311_v53 = vld [vmem:[#allocation2 + $0x610] sm:$0xff]  ;;  %v1318_v34 = vld [vmem:[#allocation2 + $0x648] sm:$0xff] }
 0x3e7   :  { %1396 = vmatpush1.bf16.msra.mxu0 %v1205_v22  ;;  %1478 = vmatpush1.bf16.msra.mxu1 %v1207_v35  ;;  %v1320_v22 = vld [vmem:[#allocation2 + $0x658] sm:$0xff]  ;;  %v1317_v35 = vld [vmem:[#allocation2 + $0x640] sm:$0xff] }
 0x3e8   :  { %1397 = vmatprep.subr.bf16.mxu0 %v1214_v36  ;;  %1479 = vmatprep.subr.bf16.mxu1 %v1216_v37  ;;  %v1319_v36 = vld [vmem:[#allocation2 + $0x650] sm:$0xff]  ;;  %v1326_v37 = vld [vmem:[#allocation2 + $0x688] sm:$0xff] }
 0x3eb   :  { %1398 = vmatpush1.bf16.msra.mxu0 %v1213_v54  ;;  %1480 = vmatpush1.bf16.msra.mxu1 %v1215_v38  ;;  %v1328_v54 = vld [vmem:[#allocation2 + $0x698] sm:$0xff]  ;;  %v1325_v38 = vld [vmem:[#allocation2 + $0x680] sm:$0xff] }
 0x3ec   :  { %1399 = vmatprep.subr.bf16.mxu0 %v1222_v40  ;;  %1481 = vmatprep.subr.bf16.mxu1 %v1224_v42  ;;  %v1327_v40 = vld [vmem:[#allocation2 + $0x690] sm:$0xff]  ;;  %v1334_v42 = vld [vmem:[#allocation2 + $0x6c8] sm:$0xff] }
 0x3ef   :  { %1400 = vmatpush1.bf16.msra.mxu0 %v1221_v43  ;;  %1482 = vmatpush1.bf16.msra.mxu1 %v1223_v46  ;;  %v1336_v43 = vld [vmem:[#allocation2 + $0x6d8] sm:$0xff]  ;;  %v1333_v46 = vld [vmem:[#allocation2 + $0x6c0] sm:$0xff] }
 0x3f0   :  { %1401 = vmatprep.subr.bf16.mxu0 %v1230_v49  ;;  %1483 = vmatprep.subr.bf16.mxu1 %v1232_v50  ;;  %v1335_v49 = vld [vmem:[#allocation2 + $0x6d0] sm:$0xff]  ;;  %v1342_v50 = vld [vmem:[#allocation2 + $0x708] sm:$0xff] }
 0x3f3   :  { %1402 = vmatpush1.bf16.msra.mxu0 %v1229_v51  ;;  %1484 = vmatpush1.bf16.msra.mxu1 %v1231_v52  ;;  %v1344_v51 = vld [vmem:[#allocation2 + $0x718] sm:$0xff]  ;;  %v1341_v52 = vld [vmem:[#allocation2 + $0x700] sm:$0xff] }
 0x3f4   :  { %1403 = vmatprep.subr.bf16.mxu0 %v1238_v55  ;;  %1485 = vmatprep.subr.bf16.mxu1 %v1240_v56  ;;  %v1343_v55 = vld [vmem:[#allocation2 + $0x710] sm:$0xff]  ;;  %v1350_v56 = vld [vmem:[#allocation2 + $0x748] sm:$0xff] }
 0x3f7   :  { %1404 = vmatpush1.bf16.msra.mxu0 %v1237_v57  ;;  %1486 = vmatpush1.bf16.msra.mxu1 %v1239_v58  ;;  %v1352_v57 = vld [vmem:[#allocation2 + $0x758] sm:$0xff]  ;;  %v1349_v58 = vld [vmem:[#allocation2 + $0x740] sm:$0xff] }
 0x3f8   :  { %1414 = vmatprep.subr.bf16.mxu0 %v1246_v59  ;;  %1496 = vmatprep.subr.bf16.mxu1 %v1248_v60  ;;  %v1351_v59 = vld [vmem:[#allocation2 + $0x750] sm:$0xff]  ;;  %v1358_v60 = vld [vmem:[#allocation2 + $0x788] sm:$0xff] }
 0x3fa   :  { %1406 = vmatmul.mubr.bf16.vlgmr.msra.gmra.mrb[12].mxu0 %v3058_v61  ;;  %1488 = vmatmul.mubr.bf16.vlgmr.msra.gmra.mrb[8].mxu1 %v3058_v61 }
 0x3fb   :  { %1415 = vmatpush1.bf16.msra.mxu0 %v1245_v62  ;;  %1497 = vmatpush1.bf16.msra.mxu1 %v1247_v63  ;;  %v1360_v62 = vld [vmem:[#allocation2 + $0x798] sm:$0xff]  ;;  %v1357_v63 = vld [vmem:[#allocation2 + $0x780] sm:$0xff] }
 0x3fc   :  { %1416 = vmatprep.subr.bf16.mxu0 %v1254_v0  ;;  %1498 = vmatprep.subr.bf16.mxu1 %v1256_v1  ;;  %v1359_v0 = vld [vmem:[#allocation2 + $0x790] sm:$0xff]  ;;  %v1366_v1 = vld [vmem:[#allocation2 + $0x7c8] sm:$0xff] }
 0x3fd   :  { %1446 = vmatprep.mubr.bf16.mxu0 %v3062_v2  ;;  %1528 = vmatprep.mubr.bf16.mxu1 %v3062_v2 }
 0x3ff   :  { %1417 = vmatpush1.bf16.msra.mxu0 %v1253_v39  ;;  %1499 = vmatpush1.bf16.msra.mxu1 %v1255_v3  ;;  %v1368_v39 = vld [vmem:[#allocation2 + $0x7d8] sm:$0xff]  ;;  %v1365_v3 = vld [vmem:[#allocation2 + $0x7c0] sm:$0xff] }
 0x400   :  { %1418 = vmatprep.subr.bf16.mxu0 %v1262_v4  ;;  %1500 = vmatprep.subr.bf16.mxu1 %v1264_v5  ;;  %v1367_v4 = vld [vmem:[#allocation2 + $0x7d0] sm:$0xff]  ;;  %v1122_v5 = vld [vmem:[#allocation2 + $0x28] sm:$0xff] }
 0x403   :  { %1419 = vmatpush1.bf16.msra.mxu0 %v1261_v44  ;;  %1501 = vmatpush1.bf16.msra.mxu1 %v1263_v6  ;;  %v1124_v44 = vld [vmem:[#allocation2 + $0x38] sm:$0xff]  ;;  %v3070_v6 = vpack.c.bf16 %v3048_v41, %v3048_v41  ;;  %v1138_v41 = vld [vmem:[#allocation2 + $0xa8] sm:$0xff] }
 0x404   :  { %1420 = vmatprep.subr.bf16.mxu0 %v1270_v8  ;;  %1502 = vmatprep.subr.bf16.mxu1 %v1272_v10  ;;  %v1121_v8 = vld [vmem:[#allocation2 + $0x20] sm:$0xff]  ;;  %v1123_v10 = vld [vmem:[#allocation2 + $0x30] sm:$0xff] }
 0x407   :  { %1421 = vmatpush1.bf16.msra.mxu0 %v1269_v11  ;;  %1503 = vmatpush1.bf16.msra.mxu1 %v1271_v12  ;;  %v1130_v11 = vld [vmem:[#allocation2 + $0x68] sm:$0xff]  ;;  %v1132_v12 = vld [vmem:[#allocation2 + $0x78] sm:$0xff] }
 0x408   :  { %1422 = vmatprep.subr.bf16.mxu0 %v1278_v13  ;;  %1504 = vmatprep.subr.bf16.mxu1 %v1280_v14  ;;  %v1129_v13 = vld [vmem:[#allocation2 + $0x60] sm:$0xff]  ;;  %v1131_v14 = vld [vmem:[#allocation2 + $0x70] sm:$0xff] }
 0x40b   :  { %1423 = vmatpush1.bf16.msra.mxu0 %v1277_v15  ;;  %1505 = vmatpush1.bf16.msra.mxu1 %v1279_v16  ;;  %v1140_v15 = vld [vmem:[#allocation2 + $0xb8] sm:$0xff]  ;;  %v1137_v16 = vld [vmem:[#allocation2 + $0xa0] sm:$0xff] }
 0x40c   :  { %1424 = vmatprep.subr.bf16.mxu0 %v1286_v17  ;;  %1506 = vmatprep.subr.bf16.mxu1 %v1288_v18  ;;  %v1139_v17 = vld [vmem:[#allocation2 + $0xb0] sm:$0xff]  ;;  %v1146_v18 = vld [vmem:[#allocation2 + $0xe8] sm:$0xff] }
 0x40f   :  { %1425 = vmatpush1.bf16.msra.mxu0 %v1285_v19  ;;  %1507 = vmatpush1.bf16.msra.mxu1 %v1287_v20  ;;  %v1148_v19 = vld [vmem:[#allocation2 + $0xf8] sm:$0xff]  ;;  %v1145_v20 = vld [vmem:[#allocation2 + $0xe0] sm:$0xff] }
 0x410   :  { %1426 = vmatprep.subr.bf16.mxu0 %v1294_v21  ;;  %1508 = vmatprep.subr.bf16.mxu1 %v1296_v26  ;;  %v1147_v21 = vld [vmem:[#allocation2 + $0xf0] sm:$0xff]  ;;  %v1154_v26 = vld [vmem:[#allocation2 + $0x128] sm:$0xff] }
 0x413   :  { %1427 = vmatpush1.bf16.msra.mxu0 %v1293_v47  ;;  %1509 = vmatpush1.bf16.msra.mxu1 %v1295_v27  ;;  %v1156_v47 = vld [vmem:[#allocation2 + $0x138] sm:$0xff]  ;;  %v1155_v27 = vld [vmem:[#allocation2 + $0x130] sm:$0xff] }
 0x414   :  { %1428 = vmatprep.subr.bf16.mxu0 %v1302_v28  ;;  %1510 = vmatprep.subr.bf16.mxu1 %v1304_v48  ;;  %v1162_v28 = vld [vmem:[#allocation2 + $0x168] sm:$0xff]  ;;  %v1164_v48 = vld [vmem:[#allocation2 + $0x178] sm:$0xff] }
 0x417   :  { %1429 = vmatpush1.bf16.msra.mxu0 %v1301_v29  ;;  %1511 = vmatpush1.bf16.msra.mxu1 %v1303_v30  ;;  %v1161_v29 = vld [vmem:[#allocation2 + $0x160] sm:$0xff]  ;;  %v1163_v30 = vld [vmem:[#allocation2 + $0x170] sm:$0xff] }
 0x418   :  { %1430 = vmatprep.subr.bf16.mxu0 %v1310_v31  ;;  %1512 = vmatprep.subr.bf16.mxu1 %v1312_v32  ;;  %v1170_v31 = vld [vmem:[#allocation2 + $0x1a8] sm:$0xff]  ;;  %v1172_v32 = vld [vmem:[#allocation2 + $0x1b8] sm:$0xff] }
 0x41b   :  { %1431 = vmatpush1.bf16.msra.mxu0 %v1309_v33  ;;  %1513 = vmatpush1.bf16.msra.mxu1 %v1311_v53  ;;  %v1169_v33 = vld [vmem:[#allocation2 + $0x1a0] sm:$0xff]  ;;  %v1171_v53 = vld [vmem:[#allocation2 + $0x1b0] sm:$0xff] }
 0x41c   :  { %1432 = vmatprep.subr.bf16.mxu0 %v1318_v34  ;;  %1514 = vmatprep.subr.bf16.mxu1 %v1320_v22  ;;  %v1178_v34 = vld [vmem:[#allocation2 + $0x1e8] sm:$0xff]  ;;  %v1180_v22 = vld [vmem:[#allocation2 + $0x1f8] sm:$0xff] }
 0x41f   :  { %1433 = vmatpush1.bf16.msra.mxu0 %v1317_v35  ;;  %1515 = vmatpush1.bf16.msra.mxu1 %v1319_v36  ;;  %v1177_v35 = vld [vmem:[#allocation2 + $0x1e0] sm:$0xff]  ;;  %v1179_v36 = vld [vmem:[#allocation2 + $0x1f0] sm:$0xff] }
 0x420   :  { %1434 = vmatprep.subr.bf16.mxu0 %v1326_v37  ;;  %1516 = vmatprep.subr.bf16.mxu1 %v1328_v54  ;;  %v1186_v37 = vld [vmem:[#allocation2 + $0x228] sm:$0xff]  ;;  %v1188_v54 = vld [vmem:[#allocation2 + $0x238] sm:$0xff] }
 0x423   :  { %1435 = vmatpush1.bf16.msra.mxu0 %v1325_v38  ;;  %1517 = vmatpush1.bf16.msra.mxu1 %v1327_v40  ;;  %v1185_v38 = vld [vmem:[#allocation2 + $0x220] sm:$0xff]  ;;  %v1187_v40 = vld [vmem:[#allocation2 + $0x230] sm:$0xff] }
 0x424   :  { %1436 = vmatprep.subr.bf16.mxu0 %v1334_v42  ;;  %1518 = vmatprep.subr.bf16.mxu1 %v1336_v43  ;;  %v1194_v42 = vld [vmem:[#allocation2 + $0x268] sm:$0xff]  ;;  %v1196_v43 = vld [vmem:[#allocation2 + $0x278] sm:$0xff] }
 0x427   :  { %1437 = vmatpush1.bf16.msra.mxu0 %v1333_v46  ;;  %1519 = vmatpush1.bf16.msra.mxu1 %v1335_v49  ;;  %v1193_v46 = vld [vmem:[#allocation2 + $0x260] sm:$0xff]  ;;  %v1195_v49 = vld [vmem:[#allocation2 + $0x270] sm:$0xff] }
 0x428   :  { %1438 = vmatprep.subr.bf16.mxu0 %v1342_v50  ;;  %1520 = vmatprep.subr.bf16.mxu1 %v1344_v51  ;;  %v1202_v50 = vld [vmem:[#allocation2 + $0x2a8] sm:$0xff]  ;;  %v1204_v51 = vld [vmem:[#allocation2 + $0x2b8] sm:$0xff] }
 0x42b   :  { %1439 = vmatpush1.bf16.msra.mxu0 %v1341_v52  ;;  %1521 = vmatpush1.bf16.msra.mxu1 %v1343_v55  ;;  %v1201_v52 = vld [vmem:[#allocation2 + $0x2a0] sm:$0xff]  ;;  %v1203_v55 = vld [vmem:[#allocation2 + $0x2b0] sm:$0xff] }
 0x42c   :  { %1440 = vmatprep.subr.bf16.mxu0 %v1350_v56  ;;  %1522 = vmatprep.subr.bf16.mxu1 %v1352_v57  ;;  %v1210_v56 = vld [vmem:[#allocation2 + $0x2e8] sm:$0xff]  ;;  %v1212_v57 = vld [vmem:[#allocation2 + $0x2f8] sm:$0xff] }
 0x42f   :  { %1441 = vmatpush1.bf16.msra.mxu0 %v1349_v58  ;;  %1523 = vmatpush1.bf16.msra.mxu1 %v1351_v59  ;;  %v1209_v58 = vld [vmem:[#allocation2 + $0x2e0] sm:$0xff]  ;;  %v1211_v59 = vld [vmem:[#allocation2 + $0x2f0] sm:$0xff] }
 0x430   :  { %1442 = vmatprep.subr.bf16.mxu0 %v1358_v60  ;;  %1524 = vmatprep.subr.bf16.mxu1 %v1360_v62  ;;  %v1218_v60 = vld [vmem:[#allocation2 + $0x328] sm:$0xff]  ;;  %v1220_v62 = vld [vmem:[#allocation2 + $0x338] sm:$0xff] }
 0x433   :  { %1443 = vmatpush1.bf16.msra.mxu0 %v1357_v63  ;;  %1525 = vmatpush1.bf16.msra.mxu1 %v1359_v0  ;;  %v1217_v63 = vld [vmem:[#allocation2 + $0x320] sm:$0xff]  ;;  %v1219_v0 = vld [vmem:[#allocation2 + $0x330] sm:$0xff] }
 0x434   :  { %1444 = vmatprep.subr.bf16.mxu0 %v1366_v1  ;;  %1526 = vmatprep.subr.bf16.mxu1 %v1368_v39  ;;  %v1226_v1 = vld [vmem:[#allocation2 + $0x368] sm:$0xff]  ;;  %v1228_v39 = vld [vmem:[#allocation2 + $0x378] sm:$0xff] }
 0x437   :  { %1445 = vmatpush1.bf16.msra.mxu0 %v1365_v3  ;;  %1527 = vmatpush1.bf16.msra.mxu1 %v1367_v4  ;;  %v1225_v3 = vld [vmem:[#allocation2 + $0x360] sm:$0xff]  ;;  %v1227_v4 = vld [vmem:[#allocation2 + $0x370] sm:$0xff] }
 0x438   :  { %1537 = vmatprep.subr.bf16.mxu0 %v1122_v5  ;;  %1619 = vmatprep.subr.bf16.mxu1 %v1124_v44  ;;  %v1234_v5 = vld [vmem:[#allocation2 + $0x3a8] sm:$0xff]  ;;  %v1236_v44 = vld [vmem:[#allocation2 + $0x3b8] sm:$0xff] }
 0x43a   :  { %1447 = vmatmul.mubr.bf16.vlgmr.msra.gmra.mrb[12].mxu0 %v3070_v6  ;;  %1529 = vmatmul.mubr.bf16.vlgmr.msra.gmra.mrb[8].mxu1 %v3070_v6 }
 0x43b   :  { %1538 = vmatpush1.bf16.msra.mxu0 %v1121_v8  ;;  %1620 = vmatpush1.bf16.msra.mxu1 %v1123_v10  ;;  %v1233_v8 = vld [vmem:[#allocation2 + $0x3a0] sm:$0xff]  ;;  %v1235_v10 = vld [vmem:[#allocation2 + $0x3b0] sm:$0xff] }
 0x43c   :  { %1539 = vmatprep.subr.bf16.mxu0 %v1130_v11  ;;  %1621 = vmatprep.subr.bf16.mxu1 %v1132_v12  ;;  %v1242_v11 = vld [vmem:[#allocation2 + $0x3e8] sm:$0xff]  ;;  %v1244_v12 = vld [vmem:[#allocation2 + $0x3f8] sm:$0xff] }
 0x43d   :  { %1569 = vmatprep.mubr.bf16.mxu0 %v3052_v45  ;;  %1651 = vmatprep.mubr.bf16.mxu1 %v3052_v45  ;;  %v1153_v45 = vld [vmem:[#allocation2 + $0x120] sm:$0xff] }
 0x43f   :  { %1540 = vmatpush1.bf16.msra.mxu0 %v1129_v13  ;;  %1622 = vmatpush1.bf16.msra.mxu1 %v1131_v14  ;;  %v1241_v13 = vld [vmem:[#allocation2 + $0x3e0] sm:$0xff]  ;;  %v1243_v14 = vld [vmem:[#allocation2 + $0x3f0] sm:$0xff] }
 0x440   :  { %1541 = vmatprep.subr.bf16.mxu0 %v1138_v41  ;;  %1623 = vmatprep.subr.bf16.mxu1 %v1140_v15  ;;  %v1250_v41 = vld [vmem:[#allocation2 + $0x428] sm:$0xff]  ;;  %v1252_v15 = vld [vmem:[#allocation2 + $0x438] sm:$0xff] }
 0x443   :  { %1542 = vmatpush1.bf16.msra.mxu0 %v1137_v16  ;;  %1624 = vmatpush1.bf16.msra.mxu1 %v1139_v17  ;;  %v1249_v16 = vld [vmem:[#allocation2 + $0x420] sm:$0xff]  ;;  %v1251_v17 = vld [vmem:[#allocation2 + $0x430] sm:$0xff] }
 0x444   :  { %1543 = vmatprep.subr.bf16.mxu0 %v1146_v18  ;;  %1625 = vmatprep.subr.bf16.mxu1 %v1148_v19  ;;  %v1258_v18 = vld [vmem:[#allocation2 + $0x468] sm:$0xff]  ;;  %v1260_v19 = vld [vmem:[#allocation2 + $0x478] sm:$0xff] }
 0x447   :  { %1544 = vmatpush1.bf16.msra.mxu0 %v1145_v20  ;;  %1626 = vmatpush1.bf16.msra.mxu1 %v1147_v21  ;;  %v1257_v20 = vld [vmem:[#allocation2 + $0x460] sm:$0xff]  ;;  %v1259_v21 = vld [vmem:[#allocation2 + $0x470] sm:$0xff] }
 0x448   :  { %1545 = vmatprep.subr.bf16.mxu0 %v1154_v26  ;;  %1627 = vmatprep.subr.bf16.mxu1 %v1156_v47  ;;  %v1266_v26 = vld [vmem:[#allocation2 + $0x4a8] sm:$0xff]  ;;  %v1268_v47 = vld [vmem:[#allocation2 + $0x4b8] sm:$0xff] }
 0x44b   :  { %1546 = vmatpush1.bf16.msra.mxu0 %v1153_v45  ;;  %1628 = vmatpush1.bf16.msra.mxu1 %v1155_v27  ;;  %v1265_v45 = vld [vmem:[#allocation2 + $0x4a0] sm:$0xff]  ;;  %v1267_v27 = vld [vmem:[#allocation2 + $0x4b0] sm:$0xff] }
 0x44c   :  { %1547 = vmatprep.subr.bf16.mxu0 %v1162_v28  ;;  %1629 = vmatprep.subr.bf16.mxu1 %v1164_v48  ;;  %v1274_v28 = vld [vmem:[#allocation2 + $0x4e8] sm:$0xff]  ;;  %v1273_v48 = vld [vmem:[#allocation2 + $0x4e0] sm:$0xff] }
 0x44f   :  { %1548 = vmatpush1.bf16.msra.mxu0 %v1161_v29  ;;  %1630 = vmatpush1.bf16.msra.mxu1 %v1163_v30  ;;  %v1275_v29 = vld [vmem:[#allocation2 + $0x4f0] sm:$0xff]  ;;  %v1282_v30 = vld [vmem:[#allocation2 + $0x528] sm:$0xff] }
 0x450   :  { %1549 = vmatprep.subr.bf16.mxu0 %v1170_v31  ;;  %1631 = vmatprep.subr.bf16.mxu1 %v1172_v32  ;;  %v1284_v31 = vld [vmem:[#allocation2 + $0x538] sm:$0xff]  ;;  %v1283_v32 = vld [vmem:[#allocation2 + $0x530] sm:$0xff] }
 0x453   :  { %1550 = vmatpush1.bf16.msra.mxu0 %v1169_v33  ;;  %1632 = vmatpush1.bf16.msra.mxu1 %v1171_v53  ;;  %v1290_v33 = vld [vmem:[#allocation2 + $0x568] sm:$0xff]  ;;  %v1292_v53 = vld [vmem:[#allocation2 + $0x578] sm:$0xff] }
 0x454   :  { %1551 = vmatprep.subr.bf16.mxu0 %v1178_v34  ;;  %1633 = vmatprep.subr.bf16.mxu1 %v1180_v22  ;;  %v1289_v34 = vld [vmem:[#allocation2 + $0x560] sm:$0xff]  ;;  %v1291_v22 = vld [vmem:[#allocation2 + $0x570] sm:$0xff] }
 0x457   :  { %1552 = vmatpush1.bf16.msra.mxu0 %v1177_v35  ;;  %1634 = vmatpush1.bf16.msra.mxu1 %v1179_v36  ;;  %v1298_v35 = vld [vmem:[#allocation2 + $0x5a8] sm:$0xff]  ;;  %v1300_v36 = vld [vmem:[#allocation2 + $0x5b8] sm:$0xff] }
 0x458   :  { %1553 = vmatprep.subr.bf16.mxu0 %v1186_v37  ;;  %1635 = vmatprep.subr.bf16.mxu1 %v1188_v54  ;;  %v1297_v37 = vld [vmem:[#allocation2 + $0x5a0] sm:$0xff]  ;;  %v1299_v54 = vld [vmem:[#allocation2 + $0x5b0] sm:$0xff] }
 0x45b   :  { %1554 = vmatpush1.bf16.msra.mxu0 %v1185_v38  ;;  %1636 = vmatpush1.bf16.msra.mxu1 %v1187_v40  ;;  %v1306_v38 = vld [vmem:[#allocation2 + $0x5e8] sm:$0xff]  ;;  %v1308_v40 = vld [vmem:[#allocation2 + $0x5f8] sm:$0xff] }
 0x45c   :  { %1555 = vmatprep.subr.bf16.mxu0 %v1194_v42  ;;  %1637 = vmatprep.subr.bf16.mxu1 %v1196_v43  ;;  %v1305_v42 = vld [vmem:[#allocation2 + $0x5e0] sm:$0xff]  ;;  %v1307_v43 = vld [vmem:[#allocation2 + $0x5f0] sm:$0xff] }
 0x45f   :  { %1556 = vmatpush1.bf16.msra.mxu0 %v1193_v46  ;;  %1638 = vmatpush1.bf16.msra.mxu1 %v1195_v49  ;;  %v1314_v46 = vld [vmem:[#allocation2 + $0x628] sm:$0xff]  ;;  %v1316_v49 = vld [vmem:[#allocation2 + $0x638] sm:$0xff] }
 0x460   :  { %1557 = vmatprep.subr.bf16.mxu0 %v1202_v50  ;;  %1639 = vmatprep.subr.bf16.mxu1 %v1204_v51  ;;  %v1313_v50 = vld [vmem:[#allocation2 + $0x620] sm:$0xff]  ;;  %v1315_v51 = vld [vmem:[#allocation2 + $0x630] sm:$0xff] }
 0x463   :  { %1558 = vmatpush1.bf16.msra.mxu0 %v1201_v52  ;;  %1640 = vmatpush1.bf16.msra.mxu1 %v1203_v55  ;;  %v1322_v52 = vld [vmem:[#allocation2 + $0x668] sm:$0xff]  ;;  %v1324_v55 = vld [vmem:[#allocation2 + $0x678] sm:$0xff] }
 0x464   :  { %1559 = vmatprep.subr.bf16.mxu0 %v1210_v56  ;;  %1641 = vmatprep.subr.bf16.mxu1 %v1212_v57  ;;  %v1321_v56 = vld [vmem:[#allocation2 + $0x660] sm:$0xff]  ;;  %v1323_v57 = vld [vmem:[#allocation2 + $0x670] sm:$0xff] }
 0x467   :  { %1560 = vmatpush1.bf16.msra.mxu0 %v1209_v58  ;;  %1642 = vmatpush1.bf16.msra.mxu1 %v1211_v59  ;;  %v1330_v58 = vld [vmem:[#allocation2 + $0x6a8] sm:$0xff]  ;;  %v1332_v59 = vld [vmem:[#allocation2 + $0x6b8] sm:$0xff] }
 0x468   :  { %1561 = vmatprep.subr.bf16.mxu0 %v1218_v60  ;;  %1643 = vmatprep.subr.bf16.mxu1 %v1220_v62  ;;  %v1329_v60 = vld [vmem:[#allocation2 + $0x6a0] sm:$0xff]  ;;  %v1331_v62 = vld [vmem:[#allocation2 + $0x6b0] sm:$0xff] }
 0x46b   :  { %1562 = vmatpush1.bf16.msra.mxu0 %v1217_v63  ;;  %1644 = vmatpush1.bf16.msra.mxu1 %v1219_v0  ;;  %v1338_v63 = vld [vmem:[#allocation2 + $0x6e8] sm:$0xff]  ;;  %v1340_v0 = vld [vmem:[#allocation2 + $0x6f8] sm:$0xff] }
 0x46c   :  { %1563 = vmatprep.subr.bf16.mxu0 %v1226_v1  ;;  %1645 = vmatprep.subr.bf16.mxu1 %v1228_v39  ;;  %v1337_v1 = vld [vmem:[#allocation2 + $0x6e0] sm:$0xff]  ;;  %v1339_v39 = vld [vmem:[#allocation2 + $0x6f0] sm:$0xff] }
 0x46f   :  { %1564 = vmatpush1.bf16.msra.mxu0 %v1225_v3  ;;  %1646 = vmatpush1.bf16.msra.mxu1 %v1227_v4  ;;  %v1346_v3 = vld [vmem:[#allocation2 + $0x728] sm:$0xff]  ;;  %v1348_v4 = vld [vmem:[#allocation2 + $0x738] sm:$0xff] }
 0x470   :  { %1565 = vmatprep.subr.bf16.mxu0 %v1234_v5  ;;  %1647 = vmatprep.subr.bf16.mxu1 %v1236_v44  ;;  %v1345_v5 = vld [vmem:[#allocation2 + $0x720] sm:$0xff]  ;;  %v1347_v44 = vld [vmem:[#allocation2 + $0x730] sm:$0xff] }
 0x473   :  { %1566 = vmatpush1.bf16.msra.mxu0 %v1233_v8  ;;  %1648 = vmatpush1.bf16.msra.mxu1 %v1235_v10  ;;  %v1354_v8 = vld [vmem:[#allocation2 + $0x768] sm:$0xff]  ;;  %v1356_v10 = vld [vmem:[#allocation2 + $0x778] sm:$0xff] }
 0x474   :  { %1567 = vmatprep.subr.bf16.mxu0 %v1242_v11  ;;  %1649 = vmatprep.subr.bf16.mxu1 %v1244_v12  ;;  %v1353_v11 = vld [vmem:[#allocation2 + $0x760] sm:$0xff]  ;;  %v1355_v12 = vld [vmem:[#allocation2 + $0x770] sm:$0xff] }
 0x477   :  { %1568 = vmatpush1.bf16.msra.mxu0 %v1241_v13  ;;  %1650 = vmatpush1.bf16.msra.mxu1 %v1243_v14  ;;  %v1362_v13 = vld [vmem:[#allocation2 + $0x7a8] sm:$0xff]  ;;  %v1364_v14 = vld [vmem:[#allocation2 + $0x7b8] sm:$0xff] }
 0x478   :  { %1578 = vmatprep.subr.bf16.mxu0 %v1250_v41  ;;  %1660 = vmatprep.subr.bf16.mxu1 %v1252_v15  ;;  %v1361_v41 = vld [vmem:[#allocation2 + $0x7a0] sm:$0xff]  ;;  %v1363_v15 = vld [vmem:[#allocation2 + $0x7b0] sm:$0xff] }
 0x47a   :  { %1570 = vmatmul.mubr.bf16.vlgmr.msra.gmra.mrb[16].mxu0 %v3058_v61  ;;  %1652 = vmatmul.mubr.bf16.vlgmr.msra.gmra.mrb[12].mxu1 %v3058_v61  ;;  %v1276_v61 = vld [vmem:[#allocation2 + $0x4f8] sm:$0xff] }
 0x47b   :  { %1579 = vmatpush1.bf16.msra.mxu0 %v1249_v16  ;;  %1661 = vmatpush1.bf16.msra.mxu1 %v1251_v17  ;;  %v1370_v16 = vld [vmem:[#allocation2 + $0x7e8] sm:$0xff]  ;;  %v1372_v17 = vld [vmem:[#allocation2 + $0x7f8] sm:$0xff] }
 0x47c   :  { %1580 = vmatprep.subr.bf16.mxu0 %v1258_v18  ;;  %1662 = vmatprep.subr.bf16.mxu1 %v1260_v19  ;;  %v1369_v18 = vld [vmem:[#allocation2 + $0x7e0] sm:$0xff]  ;;  %v1371_v19 = vld [vmem:[#allocation2 + $0x7f0] sm:$0xff] }
 0x47d   :  { %1610 = vmatprep.mubr.bf16.mxu0 %v3062_v2  ;;  %1692 = vmatprep.mubr.bf16.mxu1 %v3062_v2  ;;  %v1281_v2 = vld [vmem:[#allocation2 + $0x520] sm:$0xff] }
 0x47f   :  { %1581 = vmatpush1.bf16.msra.mxu0 %v1257_v20  ;;  %1663 = vmatpush1.bf16.msra.mxu1 %v1259_v21 }
 0x480   :  { %1582 = vmatprep.subr.bf16.mxu0 %v1266_v26  ;;  %1664 = vmatprep.subr.bf16.mxu1 %v1268_v47 }
 0x483   :  { %1583 = vmatpush1.bf16.msra.mxu0 %v1265_v45  ;;  %1665 = vmatpush1.bf16.msra.mxu1 %v1267_v27 }
 0x484   :  { %1584 = vmatprep.subr.bf16.mxu0 %v1274_v28  ;;  %1666 = vmatprep.subr.bf16.mxu1 %v1276_v61 }
 0x487   :  { %1585 = vmatpush1.bf16.msra.mxu0 %v1273_v48  ;;  %1667 = vmatpush1.bf16.msra.mxu1 %v1275_v29 }
 0x488   :  { %1586 = vmatprep.subr.bf16.mxu0 %v1282_v30  ;;  %1668 = vmatprep.subr.bf16.mxu1 %v1284_v31 }
 0x48b   :  { %1587 = vmatpush1.bf16.msra.mxu0 %v1281_v2  ;;  %1669 = vmatpush1.bf16.msra.mxu1 %v1283_v32 }
 0x48c   :  { %1588 = vmatprep.subr.bf16.mxu0 %v1290_v33  ;;  %1670 = vmatprep.subr.bf16.mxu1 %v1292_v53 }
 0x48f   :  { %1589 = vmatpush1.bf16.msra.mxu0 %v1289_v34  ;;  %1671 = vmatpush1.bf16.msra.mxu1 %v1291_v22 }
 0x490   :  { %1590 = vmatprep.subr.bf16.mxu0 %v1298_v35  ;;  %1672 = vmatprep.subr.bf16.mxu1 %v1300_v36 }
 0x493   :  { %1591 = vmatpush1.bf16.msra.mxu0 %v1297_v37  ;;  %1673 = vmatpush1.bf16.msra.mxu1 %v1299_v54 }
 0x494   :  { %1592 = vmatprep.subr.bf16.mxu0 %v1306_v38  ;;  %1674 = vmatprep.subr.bf16.mxu1 %v1308_v40 }
 0x497   :  { %1593 = vmatpush1.bf16.msra.mxu0 %v1305_v42  ;;  %1675 = vmatpush1.bf16.msra.mxu1 %v1307_v43 }
 0x498   :  { %1594 = vmatprep.subr.bf16.mxu0 %v1314_v46  ;;  %1676 = vmatprep.subr.bf16.mxu1 %v1316_v49 }
 0x49b   :  { %1595 = vmatpush1.bf16.msra.mxu0 %v1313_v50  ;;  %1677 = vmatpush1.bf16.msra.mxu1 %v1315_v51 }
 0x49c   :  { %1596 = vmatprep.subr.bf16.mxu0 %v1322_v52  ;;  %1678 = vmatprep.subr.bf16.mxu1 %v1324_v55 }
 0x49f   :  { %1597 = vmatpush1.bf16.msra.mxu0 %v1321_v56  ;;  %1679 = vmatpush1.bf16.msra.mxu1 %v1323_v57 }
 0x4a0   :  { %1598 = vmatprep.subr.bf16.mxu0 %v1330_v58  ;;  %1680 = vmatprep.subr.bf16.mxu1 %v1332_v59 }
 0x4a3   :  { %1599 = vmatpush1.bf16.msra.mxu0 %v1329_v60  ;;  %1681 = vmatpush1.bf16.msra.mxu1 %v1331_v62 }
 0x4a4   :  { %1600 = vmatprep.subr.bf16.mxu0 %v1338_v63  ;;  %1682 = vmatprep.subr.bf16.mxu1 %v1340_v0 }
 0x4a7   :  { %1601 = vmatpush1.bf16.msra.mxu0 %v1337_v1  ;;  %1683 = vmatpush1.bf16.msra.mxu1 %v1339_v39 }
 0x4a8   :  { %1602 = vmatprep.subr.bf16.mxu0 %v1346_v3  ;;  %1684 = vmatprep.subr.bf16.mxu1 %v1348_v4 }
 0x4ab   :  { %1603 = vmatpush1.bf16.msra.mxu0 %v1345_v5  ;;  %1685 = vmatpush1.bf16.msra.mxu1 %v1347_v44 }
 0x4ac   :  { %1604 = vmatprep.subr.bf16.mxu0 %v1354_v8  ;;  %1686 = vmatprep.subr.bf16.mxu1 %v1356_v10 }
 0x4af   :  { %1605 = vmatpush1.bf16.msra.mxu0 %v1353_v11  ;;  %1687 = vmatpush1.bf16.msra.mxu1 %v1355_v12 }
 0x4b0   :  { %1606 = vmatprep.subr.bf16.mxu0 %v1362_v13  ;;  %1688 = vmatprep.subr.bf16.mxu1 %v1364_v14 }
 0x4b3   :  { %1607 = vmatpush1.bf16.msra.mxu0 %v1361_v41  ;;  %1689 = vmatpush1.bf16.msra.mxu1 %v1363_v15 }
 0x4b4   :  { %1608 = vmatprep.subr.bf16.mxu0 %v1370_v16  ;;  %1690 = vmatprep.subr.bf16.mxu1 %v1372_v17 }
 0x4b7   :  { %1609 = vmatpush1.bf16.msra.mxu0 %v1369_v18  ;;  %1691 = vmatpush1.bf16.msra.mxu1 %v1371_v19 }
 0x4ba   :  { %1611 = vmatmul.mubr.bf16.vlgmr.msra.gmra.mrb[16].mxu0 %v3070_v6  ;;  %1693 = vmatmul.mubr.bf16.vlgmr.msra.gmra.mrb[12].mxu1 %v3070_v6 }
 0x50d   :  { %v3082_v20 = vpop.f32.mrb[12].mxu0  ;;  %v3084_v21 = vpop.f32.mrb[8].mxu1 }
 0x50e   :  { %v1709_v26 = vrot.slane %v3082_v20, 4  ;;  %v1757_v47 = vmul.f32 %v3082_v20, %v3082_v20  ;;  %v1721_v45 = vrot.slane %v3084_v21, 4  ;;  %v1759_v27 = vmul.f32 %v3084_v21, %v3084_v21  ;;  %v3092_v28 = vpop.f32.mrb[13].mxu0  ;;  %v3094_v61 = vpop.f32.mrb[9].mxu1 }
 0x50f   :  { %v1715_v6 = vrot.slane %v3092_v28, 4  ;;  %v1758_v48 = vmul.f32 %v3092_v28, %v3092_v28  ;;  %v1727_v29 = vrot.slane %v3094_v61, 4  ;;  %v1760_v30 = vmul.f32 %v3094_v61, %v3094_v61  ;;  %v1452_v31 = vpop.f32.mrb[14].mxu0  ;;  %v1534_v2 = vpop.f32.mrb[10].mxu1 }
 0x510   :  { %v1710_v32 = vadd.f32 %v1709_v26, %v3082_v20  ;;  %v1765_v33 = vrot.slane %v1757_v47, 4  ;;  %v1722_v53 = vadd.f32 %v1721_v45, %v3084_v21  ;;  %v1777_v34 = vrot.slane %v1759_v27, 4  ;;  %v1453_v22 = vpop.f32.mrb[15].mxu0  ;;  %v1535_v35 = vpop.f32.mrb[11].mxu1 }
 0x511   :  { %v1716_v36 = vadd.f32 %v1715_v6, %v3092_v28  ;;  %v1771_v37 = vrot.slane %v1758_v48, 4  ;;  %v1728_v54 = vadd.f32 %v1727_v29, %v3094_v61  ;;  %v1783_v38 = vrot.slane %v1760_v30, 4 }
 0x512   :  { %v1711_v40 = vrot.slane %v1710_v32, 2  ;;  %v1766_v42 = vadd.f32 %v1765_v33, %v1757_v47  ;;  %v1723_v43 = vrot.slane %v1722_v53, 2  ;;  %v1778_v46 = vadd.f32 %v1777_v34, %v1759_v27 }
 0x513   :  { %v1717_v49 = vrot.slane %v1716_v36, 2  ;;  %v1772_v50 = vadd.f32 %v1771_v37, %v1758_v48  ;;  %v1729_v51 = vrot.slane %v1728_v54, 2  ;;  %v1784_v52 = vadd.f32 %v1783_v38, %v1760_v30 }
 0x514   :  { %v1712_v55 = vadd.f32 %v1711_v40, %v1710_v32  ;;  %v1767_v56 = vrot.slane %v1766_v42, 2  ;;  %v1724_v57 = vadd.f32 %v1723_v43, %v1722_v53  ;;  %v1779_v58 = vrot.slane %v1778_v46, 2  ;;  %v1703_v43 = vld [vmem:[#allocation8 + $0x5] ss:$8 sm:$0xf0] }
 0x515   :  { %v1718_v59 = vadd.f32 %v1717_v49, %v1716_v36  ;;  %v1773_v60 = vrot.slane %v1772_v50, 2  ;;  %v1730_v62 = vadd.f32 %v1729_v51, %v1728_v54  ;;  %v1785_v63 = vrot.slane %v1784_v52, 2  ;;  %v1707_v49 = vld [vmem:[#allocation8 + $0x6] ss:$8 sm:$0xf0] }
 0x516   :  { %v1713_v0 = vrot.slane %v1712_v55, 1  ;;  %v1768_v1 = vadd.f32 %v1767_v56, %v1766_v42  ;;  %v1725_v39 = vrot.slane %v1724_v57, 1  ;;  %v1780_v3 = vadd.f32 %v1779_v58, %v1778_v46  ;;  %v1702_v42 = vld [vmem:[#allocation8 + $0x5] ss:$8 sm:$0xf] }
 0x517   :  { %v1719_v4 = vrot.slane %v1718_v59, 1  ;;  %v1774_v5 = vadd.f32 %v1773_v60, %v1772_v50  ;;  %v1731_v44 = vrot.slane %v1730_v62, 1  ;;  %v1786_v8 = vadd.f32 %v1785_v63, %v1784_v52  ;;  %v1706_v46 = vld [vmem:[#allocation8 + $0x6] ss:$8 sm:$0xf] }
 0x518   :  { %v1714_v10 = vadd.f32 %v1713_v0, %v1712_v55  ;;  %v1769_v11 = vrot.slane %v1768_v1, 1  ;;  %v1726_v12 = vadd.f32 %v1725_v39, %v1724_v57  ;;  %v1781_v13 = vrot.slane %v1780_v3, 1 }
 0x519   :  { %v1720_v14 = vadd.f32 %v1719_v4, %v1718_v59  ;;  %v1775_v41 = vrot.slane %v1774_v5, 1  ;;  %v1732_v15 = vadd.f32 %v1731_v44, %v1730_v62  ;;  %v1787_v16 = vrot.slane %v1786_v8, 1 }
 0x51a   :  { %v1770_v17 = vadd.f32 %v1769_v11, %v1768_v1  ;;  %v1813_v18 = vmul.f32 0.125, %v1714_v10  ;;  %v1782_v19 = vadd.f32 %v1781_v13, %v1780_v3  ;;  %v1815_v26 = vmul.f32 0.125, %v1726_v12 }
 0x51b   :  { %v1776_v47 = vadd.f32 %v1775_v41, %v1774_v5  ;;  %v1814_v45 = vmul.f32 0.125, %v1720_v14  ;;  %v1788_v27 = vadd.f32 %v1787_v16, %v1786_v8  ;;  %v1816_v6 = vmul.f32 0.125, %v1732_v15 }
 0x51c   :  { %v1821_v48 = vmul.f32 0.125, %v1770_v17  ;;  %v1829_v29 = vmul.f32 %v1813_v18, %v1813_v18  ;;  %v1823_v30 = vmul.f32 0.125, %v1782_v19  ;;  %v1831_v31 = vmul.f32 %v1815_v26, %v1815_v26 }
 0x51d   :  { %v1822_v2 = vmul.f32 0.125, %v1776_v47  ;;  %v1830_v32 = vmul.f32 %v1814_v45, %v1814_v45  ;;  %v1824_v53 = vmul.f32 0.125, %v1788_v27  ;;  %v1832_v34 = vmul.f32 %v1816_v6, %v1816_v6 }
 0x51e   :  { %v1837_v33 = vsub.f32 %v1821_v48, %v1829_v29  ;;  %v1839_v22 = vsub.f32 %v1823_v30, %v1831_v31  ;;  %v3106_v50 = vor.u32 %v1703_v43, %v1702_v42  ;;  %v3108_v51 = vor.u32 %v1707_v49, %v1706_v46 }
 0x51f   :  { %v1838_v35 = vsub.f32 %v1822_v2, %v1830_v32  ;;  %v1840_v37 = vsub.f32 %v1824_v53, %v1832_v34  ;;  %v1845_v52 = vsub.f32 %v3082_v20, %v1813_v18  ;;  %v1847_v57 = vsub.f32 %v3084_v21, %v1815_v26 }
 0x520   :  { %v1853_v36 = vadd.f32 0.8, %v1837_v33  ;;  %v1855_v54 = vadd.f32 0.8, %v1839_v22  ;;  %v1881_v55 = vrot.slane %v3106_v50, %v2983_v24  ;;  %v1889_v58 = vrot.slane %v3106_v50, %v3029_v7 }
 0x521   :  { %v1854_v38 = vadd.f32 0.8, %v1838_v35  ;;  %v1856_v40 = vadd.f32 0.8, %v1840_v37  ;;  %v1930_v62 = vrot.slane %v3108_v51, %v2983_v24  ;;  %v1846_v63 = vsub.f32 %v3092_v28, %v1814_v45 }
 0x522   :  { %2648 = vrsqrt.f32 %v1853_v36  ;;  %v1885_v0 = vrot.slane %v3106_v50, %v2986_v25  ;;  %v1938_v39 = vrot.slane %v3108_v51, %v3029_v7  ;;  %v1848_v21 = vsub.f32 %v3094_v61, %v1816_v6 }
 0x523   :  { %2650 = vrsqrt.f32 %v1855_v54  ;;  %v1893_v3 = vrot.slane %v3106_v50, %v3032_v9  ;;  %v1934_v24 = vrot.slane %v3108_v51, %v2986_v25  ;;  %v1942_v10 = vrot.slane %v3108_v51, %v3032_v9 }
 0x524   :  { %2652 = vrsqrt.f32 %v1854_v38 }
 0x525   :  { %2654 = vrsqrt.f32 %v1856_v40 }
 0x52c   :  { %v2649_v56 = vpop.eup %2648 }
 0x52d   :  { %v2651_v59 = vpop.eup %2650  ;;  %v1869_v60 = vmul.f32 %v2649_v56, %v1845_v52 }
 0x52e   :  { %v2653_v20 = vpop.eup %2652  ;;  %v1871_v1 = vmul.f32 %v2651_v59, %v1847_v57 }
 0x52f   :  { %v2655_v4 = vpop.eup %2654  ;;  %v1918_v5 = vmul.f32 %v1881_v55, %v1869_v60  ;;  %v1870_v44 = vmul.f32 %v2653_v20, %v1846_v63 }
 0x530   :  { %v1920_v28 = vmul.f32 %v1889_v58, %v1871_v1  ;;  %v1872_v8 = vmul.f32 %v2655_v4, %v1848_v21 }
 0x531   :  { %v1967_v11 = vadd.f32 %v1930_v62, %v1918_v5  ;;  %v1919_v12 = vmul.f32 %v1885_v0, %v1870_v44 }
 0x532   :  { %v1969_v13 = vadd.f32 %v1938_v39, %v1920_v28  ;;  %v1921_v7 = vmul.f32 %v1893_v3, %v1872_v8 }
 0x533   :  { %vm1975_vm11 = vcmp.gt.f32.partialorder %v1967_v11, 0.0  ;;  %v1983_v61 = vmul.f32 0.2, %v1967_v11  ;;  %v1968_v14 = vadd.f32 %v1934_v24, %v1919_v12 }
 0x534   :  { %vm1977_vm12 = vcmp.gt.f32.partialorder %v1969_v13, 0.0  ;;  %v1985_v41 = vmul.f32 0.2, %v1969_v13  ;;  %v1970_v15 = vadd.f32 %v1942_v10, %v1921_v7 }
 0x535   :  { %v3130_v16 = vsel %vm1975_vm11, %v1967_v11, %v1983_v61  ;;  %vm1976_vm13 = vcmp.gt.f32.partialorder %v1968_v14, 0.0  ;;  %v1984_v17 = vmul.f32 0.2, %v1968_v14 }
 0x536   :  { %v3132_v25 = vsel %vm1977_vm12, %v1969_v13, %v1985_v41  ;;  %vm1978_vm14 = vcmp.gt.f32.partialorder %v1970_v15, 0.0  ;;  %v1986_v18 = vmul.f32 0.2, %v1970_v15 }
 0x537   :  { %v3134_v19 = vsel %vm1976_vm13, %v1968_v14, %v1984_v17 }
 0x538   :  { %v3136_v9 = vsel %vm1978_vm14, %v1970_v15, %v1986_v18 }
 0x58d   :  { %v3138_v26 = vpop.f32.mrb[16].mxu0  ;;  %v3140_v47 = vpop.f32.mrb[12].mxu1 }
 0x58e   :  { %v1733_v45 = vrot.slane %v3138_v26, 4  ;;  %v1761_v27 = vmul.f32 %v3138_v26, %v3138_v26  ;;  %v1745_v6 = vrot.slane %v3140_v47, 4  ;;  %v1763_v48 = vmul.f32 %v3140_v47, %v3140_v47  ;;  %v3148_v29 = vpop.f32.mrb[17].mxu0  ;;  %v3150_v30 = vpop.f32.mrb[13].mxu1 }
 0x58f   :  { %v1739_v31 = vrot.slane %v3148_v29, 4  ;;  %v1762_v2 = vmul.f32 %v3148_v29, %v3148_v29  ;;  %v1751_v32 = vrot.slane %v3150_v30, 4  ;;  %v1764_v33 = vmul.f32 %v3150_v30, %v3150_v30  ;;  %v1616_v53 = vpop.f32.mrb[18].mxu0  ;;  %v1698_v34 = vpop.f32.mrb[14].mxu1 }
 0x590   :  { %v1734_v22 = vadd.f32 %v1733_v45, %v3138_v26  ;;  %v1789_v35 = vrot.slane %v1761_v27, 4  ;;  %v1746_v36 = vadd.f32 %v1745_v6, %v3140_v47  ;;  %v1801_v37 = vrot.slane %v1763_v48, 4  ;;  %v1617_v54 = vpop.f32.mrb[19].mxu0  ;;  %v1699_v38 = vpop.f32.mrb[15].mxu1 }
 0x591   :  { %v1740_v40 = vadd.f32 %v1739_v31, %v3148_v29  ;;  %v1795_v42 = vrot.slane %v1762_v2, 4  ;;  %v1752_v43 = vadd.f32 %v1751_v32, %v3150_v30  ;;  %v1807_v46 = vrot.slane %v1764_v33, 4 }
 0x592   :  { %v1735_v49 = vrot.slane %v1734_v22, 2  ;;  %v1790_v52 = vadd.f32 %v1789_v35, %v1761_v27  ;;  %v1747_v55 = vrot.slane %v1746_v36, 2  ;;  %v1802_v56 = vadd.f32 %v1801_v37, %v1763_v48 }
 0x593   :  { %v1741_v57 = vrot.slane %v1740_v40, 2  ;;  %v1796_v58 = vadd.f32 %v1795_v42, %v1762_v2  ;;  %v1753_v59 = vrot.slane %v1752_v43, 2  ;;  %v1808_v60 = vadd.f32 %v1807_v46, %v1764_v33 }
 0x594   :  { %v1736_v62 = vadd.f32 %v1735_v49, %v1734_v22  ;;  %v1791_v63 = vrot.slane %v1790_v52, 2  ;;  %v1748_v0 = vadd.f32 %v1747_v55, %v1746_v36  ;;  %v1803_v20 = vrot.slane %v1802_v56, 2 }
 0x595   :  { %v1742_v1 = vadd.f32 %v1741_v57, %v1740_v40  ;;  %v1797_v39 = vrot.slane %v1796_v58, 2  ;;  %v1754_v21 = vadd.f32 %v1753_v59, %v1752_v43  ;;  %v1809_v3 = vrot.slane %v1808_v60, 2 }
 0x596   :  { %v1737_v4 = vrot.slane %v1736_v62, 1  ;;  %v1792_v5 = vadd.f32 %v1791_v63, %v1790_v52  ;;  %v1749_v44 = vrot.slane %v1748_v0, 1  ;;  %v1804_v24 = vadd.f32 %v1803_v20, %v1802_v56 }
 0x597   :  { %v1743_v28 = vrot.slane %v1742_v1, 1  ;;  %v1798_v8 = vadd.f32 %v1797_v39, %v1796_v58  ;;  %v1755_v10 = vrot.slane %v1754_v21, 1  ;;  %v1810_v11 = vadd.f32 %v1809_v3, %v1808_v60 }
 0x598   :  { %v1738_v12 = vadd.f32 %v1737_v4, %v1736_v62  ;;  %v1793_v13 = vrot.slane %v1792_v5, 1  ;;  %v1750_v7 = vadd.f32 %v1749_v44, %v1748_v0  ;;  %v1805_v61 = vrot.slane %v1804_v24, 1 }
 0x599   :  { %v1744_v14 = vadd.f32 %v1743_v28, %v1742_v1  ;;  %v1799_v41 = vrot.slane %v1798_v8, 1  ;;  %v1756_v15 = vadd.f32 %v1755_v10, %v1754_v21  ;;  %v1811_v17 = vrot.slane %v1810_v11, 1 }
 0x59a   :  { %v1794_v18 = vadd.f32 %v1793_v13, %v1792_v5  ;;  %v1817_v45 = vmul.f32 0.125, %v1738_v12  ;;  %v1806_v27 = vadd.f32 %v1805_v61, %v1804_v24  ;;  %v1819_v6 = vmul.f32 0.125, %v1750_v7 }
 0x59b   :  { %v1800_v48 = vadd.f32 %v1799_v41, %v1798_v8  ;;  %v1818_v31 = vmul.f32 0.125, %v1744_v14  ;;  %v1812_v2 = vadd.f32 %v1811_v17, %v1810_v11  ;;  %v1820_v32 = vmul.f32 0.125, %v1756_v15 }
 0x59c   :  { %v1825_v33 = vmul.f32 0.125, %v1794_v18  ;;  %v1833_v53 = vmul.f32 %v1817_v45, %v1817_v45  ;;  %v1827_v34 = vmul.f32 0.125, %v1806_v27  ;;  %v1835_v22 = vmul.f32 %v1819_v6, %v1819_v6 }
 0x59d   :  { %v1826_v35 = vmul.f32 0.125, %v1800_v48  ;;  %v1834_v36 = vmul.f32 %v1818_v31, %v1818_v31  ;;  %v1828_v54 = vmul.f32 0.125, %v1812_v2  ;;  %v1836_v38 = vmul.f32 %v1820_v32, %v1820_v32 }
 0x59e   :  { %v1841_v37 = vsub.f32 %v1825_v33, %v1833_v53  ;;  %v1843_v40 = vsub.f32 %v1827_v34, %v1835_v22  ;;  %v1896_v56 = vsub.s32 4, %v2980_v23  ;;  %v1904_v57 = vsub.s32 6, %v2980_v23 }
 0x59f   :  { %v1842_v42 = vsub.f32 %v1826_v35, %v1834_v36  ;;  %v1844_v46 = vsub.f32 %v1828_v54, %v1836_v38  ;;  %v1900_v58 = vsub.s32 5, %v2980_v23  ;;  %v1908_v59 = vsub.s32 7, %v2980_v23 }
 0x5a0   :  { %v1857_v43 = vadd.f32 0.8, %v1841_v37  ;;  %v1859_v49 = vadd.f32 0.8, %v1843_v40  ;;  %v1849_v60 = vsub.f32 %v3138_v26, %v1817_v45  ;;  %v1897_v62 = vrot.slane %v3106_v50, %v1896_v56 }
 0x5a1   :  { %v1858_v52 = vadd.f32 0.8, %v1842_v42  ;;  %v1860_v55 = vadd.f32 0.8, %v1844_v46  ;;  %v1851_v0 = vsub.f32 %v3140_v47, %v1819_v6  ;;  %v1905_v20 = vrot.slane %v3106_v50, %v1904_v57 }
 0x5a2   :  { %2656 = vrsqrt.f32 %v1857_v43  ;;  %v1946_v21 = vrot.slane %v3108_v51, %v1896_v56  ;;  %v1850_v3 = vsub.f32 %v3148_v29, %v1818_v31  ;;  %v1901_v4 = vrot.slane %v3106_v50, %v1900_v58 }
 0x5a3   :  { %2658 = vrsqrt.f32 %v1859_v49  ;;  %v1954_v23 = vrot.slane %v3108_v51, %v1904_v57  ;;  %v1852_v26 = vsub.f32 %v3150_v30, %v1820_v32  ;;  %v1909_v24 = vrot.slane %v3106_v50, %v1908_v59 }
 0x5a4   :  { %2660 = vrsqrt.f32 %v1858_v52  ;;  %v1950_v10 = vrot.slane %v3108_v51, %v1900_v58  ;;  %v1958_v13 = vrot.slane %v3108_v51, %v1908_v59 }
 0x5a5   :  { %2662 = vrsqrt.f32 %v1860_v55 }
 0x5ac   :  { %v2657_v63 = vpop.eup %2656 }
 0x5ad   :  { %v2659_v1 = vpop.eup %2658  ;;  %v1873_v39 = vmul.f32 %v2657_v63, %v1849_v60 }
 0x5ae   :  { %v2661_v5 = vpop.eup %2660  ;;  %v1875_v44 = vmul.f32 %v2659_v1, %v1851_v0 }
 0x5af   :  { %v2663_v28 = vpop.eup %2662  ;;  %v1922_v47 = vmul.f32 %v1897_v62, %v1873_v39  ;;  %v1874_v8 = vmul.f32 %v2661_v5, %v1850_v3 }
 0x5b0   :  { %v1924_v11 = vmul.f32 %v1905_v20, %v1875_v44  ;;  %v1876_v12 = vmul.f32 %v2663_v28, %v1852_v26 }
 0x5b1   :  { %v1971_v29 = vadd.f32 %v1946_v21, %v1922_v47  ;;  %v1923_v7 = vmul.f32 %v1901_v4, %v1874_v8 }
 0x5b2   :  { %v1973_v61 = vadd.f32 %v1954_v23, %v1924_v11  ;;  %v1925_v14 = vmul.f32 %v1909_v24, %v1876_v12 }
 0x5b3   :  { %vm1979_vm15 = vcmp.gt.f32.partialorder %v1971_v29, 0.0  ;;  %v1987_v41 = vmul.f32 0.2, %v1971_v29  ;;  %v1972_v15 = vadd.f32 %v1950_v10, %v1923_v7 }
 0x5b4   :  { %vm1981_vm0 = vcmp.gt.f32.partialorder %v1973_v61, 0.0  ;;  %v1989_v30 = vmul.f32 0.2, %v1973_v61  ;;  %v1974_v17 = vadd.f32 %v1958_v13, %v1925_v14 }
 0x5b5   :  { %v3178_v50 = vsel %vm1979_vm15, %v1971_v29, %v1987_v41  ;;  %vm1980_vm1 = vcmp.gt.f32.partialorder %v1972_v15, 0.0  ;;  %v1988_v18 = vmul.f32 0.2, %v1972_v15 }
 0x5b6   :  { %v3180_v45 = vsel %vm1981_vm0, %v1973_v61, %v1989_v30  ;;  %vm1982_vm2 = vcmp.gt.f32.partialorder %v1974_v17, 0.0  ;;  %v1990_v27 = vmul.f32 0.2, %v1974_v17 }
 0x5b7   :  { %v3182_v6 = vsel %vm1980_vm1, %v1972_v15, %v1988_v18 }
 0x5b8   :  { %v3184_v51 = vsel %vm1982_vm2, %v1974_v17, %v1990_v27 }
 0x5b9   :  { %2806 = dma.done.wait [#allocation4 + $0x1], 8192 }
 0x5ba   :  { %2807 = vsyncadd [#allocation4 + $0x1], 4294959104  ;;  %v2004_v48 = vpack.c.bf16 %v3134_v19, %v3134_v19  ;;  %v2006_v31 = vpack.c.bf16 %v3136_v9, %v3136_v9  ;;  %v2019_v2 = vld [vmem:[#allocation3 + $0x40] sm:$0xff]  ;;  %v2020_v34 = vld [vmem:[#allocation3 + $0x48] sm:$0xff]  ;;  %v2003_v5 = vpack.c.bf16 %v3130_v16, %v3130_v16  ;;  %v2005_v44 = vpack.c.bf16 %v3132_v25, %v3132_v25  ;;  %s2830_s8 = smov [#allocation13]  }
 0x5bb   :  { %v2035_v32 = vld [vmem:[#allocation3 + $0xc0] sm:$0xff]  ;;  %2367 = vmatprep.subr.bf16.mxu0 %v2019_v2  ;;  %v2036_v22 = vld [vmem:[#allocation3 + $0xc8] sm:$0xff]  ;;  %v2021_v19 = vld [vmem:[#allocation3 + $0x50] sm:$0xff]  ;;  %v2008_v47 = vpack.c.bf16 %v3182_v6, %v3182_v6  ;;  %v2010_v8 = vpack.c.bf16 %v3184_v51, %v3184_v51  ;;  %s2244_s26 = sshll.u32 %s2830_s8, 4  ;;  %s2245_s26 = int_to_ptr.vmem [resolvable:$true] %s2244_s26 }
 0x5bc   :  { %2108 = vmatprep.mubr.bf16.mxu0 %v2004_v48  ;;  %2148 = vmatprep.mubr.bf16.mxu1 %v2006_v31  ;;  %v2011_v33 = vld [vmem:[#allocation3] sm:$0xff]  ;;  %v2012_v35 = vld [vmem:[#allocation3 + $0x8] sm:$0xff]  ;;  %v2037_v37 = vld [vmem:[#allocation3 + $0xd0] sm:$0xff]  ;;  %s2776_s27 = scalar_lea.vmem %s2245_s26, 128  ;;  %p2781_p13 = scmp.lt.s32.totalorder %s2245_s26, %s2245_s26 }
 0x5bd   :  { %2389 = vmatprep.subr.bf16.mxu1 %v2035_v32  ;;  %v2027_v53 = vld [vmem:[#allocation3 + $0x80] sm:$0xff]  ;;  %2368 = vmatpush3.bf16.msra.mxu0 %v2011_v33  ;;  %v2028_v36 = vld [vmem:[#allocation3 + $0x88] sm:$0xff]  ;;  %v2013_v9 = vld [vmem:[#allocation3 + $0x10] sm:$0xff]  ;;  %p2777_p12 = scmp.ne.s32.totalorder %s2245_s26, %s2776_s27  ;;  %p2782_p0 = scmp.lt.s32.totalorder %s2776_s27, %s2776_s27 }
 0x5be   :  { %2390 = vmatpush3.bf16.msra.mxu1 %v2027_v53  ;;  %2369 = vmatprep.subr.bf16.mxu0 %v2020_v34  ;;  %v2029_v54 = vld [vmem:[#allocation3 + $0x90] sm:$0xff]  ;;  %v2022_v38 = vld [vmem:[#allocation3 + $0x58] sm:$0xff]  ;;  %v2023_v46 = vld [vmem:[#allocation3 + $0x60] sm:$0xff] }
 0x5bf   :  { %2391 = vmatprep.subr.bf16.mxu1 %v2036_v22  ;;  %v2038_v40 = vld [vmem:[#allocation3 + $0xd8] sm:$0xff]  ;;  %v2039_v49 = vld [vmem:[#allocation3 + $0xe0] sm:$0xff]  ;;  %v2024_v56 = vld [vmem:[#allocation3 + $0x68] sm:$0xff]  ;;  %p2783_p1 = por %p2782_p0, %p2781_p13 }
 0x5c0   :  { %v2014_v42 = vld [vmem:[#allocation3 + $0x18] sm:$0xff]  ;;  %v2015_v52 = vld [vmem:[#allocation3 + $0x20] sm:$0xff]  ;;  %v2040_v57 = vld [vmem:[#allocation3 + $0xe8] sm:$0xff] }
 0x5c1   :  { %2370 = vmatpush3.bf16.msra.mxu0 %v2012_v35  ;;  %v2030_v43 = vld [vmem:[#allocation3 + $0x98] sm:$0xff]  ;;  %v2031_v55 = vld [vmem:[#allocation3 + $0xa0] sm:$0xff]  ;;  %v2016_v58 = vld [vmem:[#allocation3 + $0x28] sm:$0xff]  ;;  %v2007_v35 = vpack.c.bf16 %v3178_v50, %v3178_v50  ;;  %p2784_p2 = pnand %p2783_p1, %p2777_p12 }
 0x5c2   :  { %2392 = vmatpush3.bf16.msra.mxu1 %v2028_v36  ;;  %2371 = vmatprep.subr.bf16.mxu0 %v2021_v19  ;;  %v2032_v59 = vld [vmem:[#allocation3 + $0xa8] sm:$0xff]  ;;  %v2025_v60 = vld [vmem:[#allocation3 + $0x70] sm:$0xff]  ;;  %v2026_v20 = vld [vmem:[#allocation3 + $0x78] sm:$0xff]  ;;  %v2009_v36 = vpack.c.bf16 %v3180_v45, %v3180_v45 }
 0x5c3   :  { %2393 = vmatprep.subr.bf16.mxu1 %v2037_v37  ;;  %v2041_v62 = vld [vmem:[#allocation3 + $0xf0] sm:$0xff]  ;;  %v2042_v1 = vld [vmem:[#allocation3 + $0xf8] sm:$0xff]  ;;  %v2051_v3 = vld [vmem:[#allocation3 + $0x140] sm:$0xff] }
 0x5c4   :  { %v2017_v63 = vld [vmem:[#allocation3 + $0x30] sm:$0xff]  ;;  %v2018_v39 = vld [vmem:[#allocation3 + $0x38] sm:$0xff]  ;;  %v2067_v4 = vld [vmem:[#allocation3 + $0x1c0] sm:$0xff] }
 0x5c5   :  { %2372 = vmatpush3.bf16.msra.mxu0 %v2013_v9  ;;  %v2033_v0 = vld [vmem:[#allocation3 + $0xb0] sm:$0xff]  ;;  %v2034_v21 = vld [vmem:[#allocation3 + $0xb8] sm:$0xff]  ;;  %v2043_v23 = vld [vmem:[#allocation3 + $0x100] sm:$0xff] }
 0x5c6   :  { %2394 = vmatpush3.bf16.msra.mxu1 %v2029_v54  ;;  %2373 = vmatprep.subr.bf16.mxu0 %v2022_v38  ;;  %v2059_v26 = vld [vmem:[#allocation3 + $0x180] sm:$0xff]  ;;  %v2052_v24 = vld [vmem:[#allocation3 + $0x148] sm:$0xff]  ;;  %v2053_v10 = vld [vmem:[#allocation3 + $0x150] sm:$0xff] }
 0x5c7   :  { %2395 = vmatprep.subr.bf16.mxu1 %v2038_v40  ;;  %v2068_v28 = vld [vmem:[#allocation3 + $0x1c8] sm:$0xff]  ;;  %v2069_v11 = vld [vmem:[#allocation3 + $0x1d0] sm:$0xff]  ;;  %v2054_v29 = vld [vmem:[#allocation3 + $0x158] sm:$0xff] }
 0x5c8   :  { %v2044_v16 = vld [vmem:[#allocation3 + $0x108] sm:$0xff]  ;;  %v2045_v12 = vld [vmem:[#allocation3 + $0x110] sm:$0xff]  ;;  %v2070_v7 = vld [vmem:[#allocation3 + $0x1d8] sm:$0xff] }
 0x5c9   :  { %2374 = vmatpush3.bf16.msra.mxu0 %v2014_v42  ;;  %v2060_v25 = vld [vmem:[#allocation3 + $0x188] sm:$0xff]  ;;  %v2061_v13 = vld [vmem:[#allocation3 + $0x190] sm:$0xff]  ;;  %v2046_v61 = vld [vmem:[#allocation3 + $0x118] sm:$0xff] }
 0x5ca   :  { %2396 = vmatpush3.bf16.msra.mxu1 %v2030_v43  ;;  %2375 = vmatprep.subr.bf16.mxu0 %v2023_v46  ;;  %v2062_v14 = vld [vmem:[#allocation3 + $0x198] sm:$0xff]  ;;  %v2055_v41 = vld [vmem:[#allocation3 + $0x160] sm:$0xff]  ;;  %v2056_v18 = vld [vmem:[#allocation3 + $0x168] sm:$0xff] }
 0x5cb   :  { %2397 = vmatprep.subr.bf16.mxu1 %v2039_v49  ;;  %v2071_v15 = vld [vmem:[#allocation3 + $0x1e0] sm:$0xff]  ;;  %v2072_v27 = vld [vmem:[#allocation3 + $0x1e8] sm:$0xff]  ;;  %v2057_v48 = vld [vmem:[#allocation3 + $0x170] sm:$0xff] }
 0x5cc   :  { %v2047_v30 = vld [vmem:[#allocation3 + $0x120] sm:$0xff]  ;;  %v2048_v6 = vld [vmem:[#allocation3 + $0x128] sm:$0xff]  ;;  %v2073_v31 = vld [vmem:[#allocation3 + $0x1f0] sm:$0xff] }
 0x5cd   :  { %2376 = vmatpush3.bf16.msra.mxu0 %v2015_v52  ;;  %v2063_v17 = vld [vmem:[#allocation3 + $0x1a0] sm:$0xff]  ;;  %v2064_v51 = vld [vmem:[#allocation3 + $0x1a8] sm:$0xff]  ;;  %v2049_v2 = vld [vmem:[#allocation3 + $0x130] sm:$0xff] }
 0x5ce   :  { %2398 = vmatpush3.bf16.msra.mxu1 %v2031_v55  ;;  %2377 = vmatprep.subr.bf16.mxu0 %v2024_v56  ;;  %v2065_v32 = vld [vmem:[#allocation3 + $0x1b0] sm:$0xff]  ;;  %v2058_v33 = vld [vmem:[#allocation3 + $0x178] sm:$0xff] }
 0x5cf   :  { %2399 = vmatprep.subr.bf16.mxu1 %v2040_v57  ;;  %v2074_v53 = vld [vmem:[#allocation3 + $0x1f8] sm:$0xff]  ;;  %v2075_v9 = vld [vmem:[#allocation8 + $0x8] ss:$0 sm:$0xff] }
 0x5d0   :  { %v2050_v34 = vld [vmem:[#allocation3 + $0x138] sm:$0xff] }
 0x5d1   :  { %2378 = vmatpush3.bf16.msra.mxu0 %v2016_v58  ;;  %v2066_v22 = vld [vmem:[#allocation3 + $0x1b8] sm:$0xff] }
 0x5d2   :  { %2400 = vmatpush3.bf16.msra.mxu1 %v2032_v59  ;;  %2379 = vmatprep.subr.bf16.mxu0 %v2025_v60 }
 0x5d3   :  { %2401 = vmatprep.subr.bf16.mxu1 %v2041_v62 }
 0x5d5   :  { %2380 = vmatpush3.bf16.msra.mxu0 %v2017_v63 }
 0x5d6   :  { %2402 = vmatpush3.bf16.msra.mxu1 %v2033_v0  ;;  %2381 = vmatprep.subr.bf16.mxu0 %v2026_v20 }
 0x5d7   :  { %2403 = vmatprep.subr.bf16.mxu1 %v2042_v1 }
 0x5d9   :  { %2382 = vmatpush3.bf16.msra.mxu0 %v2018_v39 }
 0x5da   :  { %2404 = vmatpush3.bf16.msra.mxu1 %v2034_v21  ;;  %2411 = vmatprep.subr.bf16.mxu0 %v2051_v3 }
 0x5db   :  { %2433 = vmatprep.subr.bf16.mxu1 %v2067_v4 }
 0x5dc   :  { %2109 = vmatmul.mubr.bf16.vlgmr.msra.gmra.mrb[20].mxu0 %v2003_v5 }
 0x5dd   :  { %2149 = vmatmul.mubr.bf16.vlgmr.msra.gmra.mrb[16].mxu1 %v2005_v44  ;;  %2412 = vmatpush3.bf16.msra.mxu0 %v2043_v23 }
 0x5de   :  { %2434 = vmatpush3.bf16.msra.mxu1 %v2059_v26  ;;  %2413 = vmatprep.subr.bf16.mxu0 %v2052_v24 }
 0x5df   :  { %2435 = vmatprep.subr.bf16.mxu1 %v2068_v28  ;;  %2188 = vmatprep.mubr.bf16.mxu0 %v2008_v47 }
 0x5e0   :  { %2228 = vmatprep.mubr.bf16.mxu1 %v2010_v8 }
 0x5e1   :  { %2414 = vmatpush3.bf16.msra.mxu0 %v2044_v16 }
 0x5e2   :  { %2436 = vmatpush3.bf16.msra.mxu1 %v2060_v25  ;;  %2415 = vmatprep.subr.bf16.mxu0 %v2053_v10 }
 0x5e3   :  { %2437 = vmatprep.subr.bf16.mxu1 %v2069_v11 }
 0x5e5   :  { %2416 = vmatpush3.bf16.msra.mxu0 %v2045_v12 }
 0x5e6   :  { %2438 = vmatpush3.bf16.msra.mxu1 %v2061_v13  ;;  %2417 = vmatprep.subr.bf16.mxu0 %v2054_v29 }
 0x5e7   :  { %2439 = vmatprep.subr.bf16.mxu1 %v2070_v7 }
 0x5e9   :  { %2418 = vmatpush3.bf16.msra.mxu0 %v2046_v61 }
 0x5ea   :  { %2440 = vmatpush3.bf16.msra.mxu1 %v2062_v14  ;;  %2419 = vmatprep.subr.bf16.mxu0 %v2055_v41 }
 0x5eb   :  { %2441 = vmatprep.subr.bf16.mxu1 %v2071_v15 }
 0x5ed   :  { %2420 = vmatpush3.bf16.msra.mxu0 %v2047_v30 }
 0x5ee   :  { %2442 = vmatpush3.bf16.msra.mxu1 %v2063_v17  ;;  %2421 = vmatprep.subr.bf16.mxu0 %v2056_v18 }
 0x5ef   :  { %2443 = vmatprep.subr.bf16.mxu1 %v2072_v27 }
 0x5f1   :  { %2422 = vmatpush3.bf16.msra.mxu0 %v2048_v6 }
 0x5f2   :  { %2444 = vmatpush3.bf16.msra.mxu1 %v2064_v51  ;;  %2423 = vmatprep.subr.bf16.mxu0 %v2057_v48 }
 0x5f3   :  { %2445 = vmatprep.subr.bf16.mxu1 %v2073_v31 }
 0x5f5   :  { %2424 = vmatpush3.bf16.msra.mxu0 %v2049_v2 }
 0x5f6   :  { %2446 = vmatpush3.bf16.msra.mxu1 %v2065_v32  ;;  %2425 = vmatprep.subr.bf16.mxu0 %v2058_v33 }
 0x5f7   :  { %2447 = vmatprep.subr.bf16.mxu1 %v2074_v53 }
 0x5f9   :  { %2426 = vmatpush3.bf16.msra.mxu0 %v2050_v34 }
 0x5fa   :  { %2448 = vmatpush3.bf16.msra.mxu1 %v2066_v22 }
 0x5fc   :  { %2189 = vmatmul.mubr.bf16.vlgmr.msra.gmra.mrb[24].mxu0 %v2007_v35 }
 0x5fd   :  { %2229 = vmatmul.mubr.bf16.vlgmr.msra.gmra.mrb[20].mxu1 %v2009_v36 }
 0x6af   :  { %v2383_v19 = vpop.f32.mrb[20].mxu0 }
 0x6b0   :  { %v2405_v37 = vpop.f32.mrb[16].mxu1  ;;  %v2384_v54 = vpop.f32.mrb[21].mxu0 }
 0x6b1   :  { %v2406_v38 = vpop.f32.mrb[17].mxu1  ;;  %v2385_v40 = vadd.f32 %v2384_v54, %v2383_v19  ;;  %v2386_v43 = vpop.f32.mrb[22].mxu0 }
 0x6b2   :  { %v2407_v42 = vadd.f32 %v2406_v38, %v2405_v37  ;;  %v2408_v46 = vpop.f32.mrb[18].mxu1  ;;  %v2387_v49 = vpop.f32.mrb[23].mxu0 }
 0x6b3   :  { %v2409_v52 = vpop.f32.mrb[19].mxu1  ;;  %v2111_v55 = vadd.f32 %v2385_v40, %v2075_v9 }
 0x6b5   :  { %v2151_v50 = vadd.f32 %v2407_v42, %v2111_v55 }
 0x6cf   :  { %v2427_v56 = vpop.f32.mrb[24].mxu0 }
 0x6d0   :  { %v2449_v57 = vpop.f32.mrb[20].mxu1  ;;  %v2428_v45 = vpop.f32.mrb[25].mxu0 }
 0x6d1   :  { %v2450_v58 = vpop.f32.mrb[21].mxu1  ;;  %v2429_v59 = vadd.f32 %v2428_v45, %v2427_v56  ;;  %v2430_v62 = vpop.f32.mrb[26].mxu0 }
 0x6d2   :  { %v2451_v60 = vadd.f32 %v2450_v58, %v2449_v57  ;;  %v2452_v63 = vpop.f32.mrb[22].mxu1  ;;  %v2431_v0 = vpop.f32.mrb[27].mxu0 }
 0x6d3   :  { %v2453_v20 = vpop.f32.mrb[23].mxu1  ;;  %v2191_v1 = vadd.f32 %v2429_v59, %v2151_v50 }
 0x6d5   :  { %v2231_v39 = vadd.f32 %v2451_v60, %v2191_v1 }
 0x6d7   :  { %2664 = vtanh.f32 %v2231_v39 }
 0x6e1   :  { %v2665_v21 = vpop.eup %2664 }
 0x6e2   :  { %2237 = vst [vmem:[#allocation13] sm:$0xff] %v2665_v21 }
 0x6e3   :  { %2787 = shalt.err (!%p2784_p2)
}
 0x6e4   :  { %s2788_s29 = scalar_lea.hbm %s3223_s9, 128 }
 0x6e5   :  { %p2789_p3 = scmp.ne.s32.totalorder %s3223_s9, %s2788_s29  ;;  %p2792_p4 = scmp.lt.u32.totalorder %s2788_s29, %s3223_s9 }
 0x6e7   :  { %p2794_p5 = pnand %p2792_p4, %p2789_p3 }
 0x6e9   :  { %2797 = shalt.err (!%p2794_p5)
}
 0x6ea   :  { %2247 = dma.vmem_to_hbm [thread:$0]  %s2245_s26, 128, %s3223_s9, [#allocation7]  }
 0x6eb   :  { %2808 = dma.done.wait [#allocation7], 128  }
 0x6ec   :  { %2809 = vsyncadd [#allocation7], 4294967168 }
 0x6ed   :  { %2251 = vsyncpa [#allocation6], 1 }
 0x6ee   :  { %2252 = vsyncpa [#allocation9], 1 }
 0x6ef   :  { %2253 = vsyncpa [#allocation12], 1 }
 0x6f0   :  { %2254 = vsyncpa [#allocation7], 1 }
 0x6f1   :  { %2255 = vsyncmov [#allocation4] }
 0x6f4   :  { %s2256_s10 = vpop.sfrf %2255 }
 0x6f5   :  { %p2358_p6 = scmp.ne.s32.totalorder %s2256_s10, 0 }
 0x6f7   :  { %2260 = shalt.err (%p2358_p6)  }
 0x6f8   :  { %2262 = vsyncmov [#allocation4 + $0x1] }
 0x6fb   :  { %s2263_s16 = vpop.sfrf %2262 }
 0x6fc   :  { %p2359_p7 = scmp.ne.s32.totalorder %s2263_s16, 0 }
 0x6fe   :  { %2267 = shalt.err (%p2359_p7)  }

</bundles_post_ra>
